<compile_context>
chip_gen: v5e
topology: v5e:2x2
jax: 0.10.0
libtpu: 0.0.40
codegen_flags: <defaults>
</compile_context>

<pallas_src>
import jax
import jax.numpy as jnp
from jax import lax
from jax.experimental import pallas as pl
from jax.experimental.pallas import tpu as pltpu


# ----------------------------------------------------------------------------
# Small helpers
# ----------------------------------------------------------------------------
_VMEM_LIMIT = 48 * 1024 * 1024      # comfortably under v7x's 64 MiB physical


def _cdiv(a, b):
    return (a + b - 1) // b


def _round_up(n, m):
    return ((n + m - 1) // m) * m


def _lrelu(v):
    return jnp.where(v >= 0.0, v, 0.1 * v)


def _choose_tile(p, target):
    """Pick the pixel tile tm and tile count nt.

    tm is a multiple of 16 (bf16 packs 16 sublanes per vreg), tm <= target,
    and nt = ceil(p / tm) >= 2 whenever p allows it so the single "parallel"
    grid axis can be sharded across v7x's two TensorCores.  P is padded up to
    nt * tm by the caller (padded rows' BN contribution is corrected
    analytically), so no divisor of P is required.
    """
    target = max(16, (int(target) // 16) * 16)
    if p <= 16:
        return 16, 1
    half = _round_up(_cdiv(p, 2), 16)          # guarantees nt >= 2
    tm = min(target, half)
    nt = _cdiv(p, tm)
    return tm, nt


# ----------------------------------------------------------------------------
# Pallas kernels
# ----------------------------------------------------------------------------
def _matmul_bias_lrelu_stats_kernel(x_ref, w_ref, b_ref, h_ref, stats_ref):
    """One P-tile of: h = LeakyReLU(x @ w + b, 0.1).

    Emits h (cast to the output dtype, normally bf16) plus this tile's
    per-channel sum (sublane row 0) and sum-of-squares (sublane row 1) so the
    wrapper can finish BatchNorm statistics exactly across tiles.
    """
    h = jnp.dot(x_ref[...], w_ref[...], preferred_element_type=jnp.float32)
    h = h + b_ref[...]
    h = _lrelu(h)
    h_ref[...] = h.astype(h_ref.dtype)
    # Direct row stores (no iota/where filler); rows 2..7 are never read.
    stats_ref[0, 0:1, :] = jnp.sum(h, axis=0, keepdims=True)
    stats_ref[0, 1:2, :] = jnp.sum(h * h, axis=0, keepdims=True)


def _matmul_kernel(x_ref, w_ref, o_ref):
    """One P-tile of a plain matmul (ZeroConv per-tap channel projection)."""
    o_ref[...] = jnp.dot(x_ref[...], w_ref[...],
                         preferred_element_type=jnp.float32).astype(o_ref.dtype)


# ----------------------------------------------------------------------------
# Pallas pass wrappers (P-tiled, resident weights, parallel grid axis)
# ----------------------------------------------------------------------------
def _combine_bn_stats(stats, p_real, tm, pad_row):
    """Chan-style combine of per-tile (sum, sum-sq) into (mu, rstd).

    The last tile may contain (nt*tm - p_real) padded rows whose per-channel
    value is exactly `pad_row`; their contribution is subtracted before the
    combine so the statistics match the un-padded reference.
    """
    nt, _, _ = stats.shape
    s = stats[:, 0, :]
    ss = stats[:, 1, :]
    n_pad = nt * tm - p_real
    n = jnp.full((nt, 1), float(tm), jnp.float32)
    if n_pad > 0:
        s = s.at[-1].add(-float(n_pad) * pad_row)
        ss = ss.at[-1].add(-float(n_pad) * pad_row * pad_row)
        n = n.at[-1, 0].set(float(tm - n_pad))
    mu_i = s / n
    m2_i = ss - s * mu_i
    mu = jnp.sum(s, axis=0) / p_real
    m2 = jnp.sum(m2_i, axis=0) + jnp.sum(n * (mu_i - mu[None, :]) ** 2, axis=0)
    var = jnp.maximum(m2 / p_real, 0.0)        # biased variance (torch BN)
    rstd = 1.0 / jnp.sqrt(var + 1e-5)
    return mu, rstd


def _lrelu_bn_pass(x, w, b, tm, p_real, pad_row, out_dtype=jnp.bfloat16):
    """h = LeakyReLU(x @ w + b); returns (h, mu, rstd) for training-mode BN.

    `x` has p_pad = nt*tm rows (padded); `pad_row` is the exact per-channel
    value the padded rows take after bias + LeakyReLU.
    """
    p_pad, k = x.shape
    f = w.shape[1]
    nt = p_pad // tm
    h, stats = pl.pallas_call(
        _matmul_bias_lrelu_stats_kernel,
        grid=(nt,),
        in_specs=[pl.BlockSpec((tm, k), lambda i: (i, 0)),
                  pl.BlockSpec((k, f), lambda i: (0, 0)),   # resident weight
                  pl.BlockSpec((1, f), lambda i: (0, 0))],  # resident bias
        out_specs=(pl.BlockSpec((tm, f), lambda i: (i, 0)),
                   pl.BlockSpec((1, 8, f), lambda i: (i, 0, 0))),
        out_shape=(jax.ShapeDtypeStruct((p_pad, f), out_dtype),
                   jax.ShapeDtypeStruct((nt, 8, f), jnp.float32)),
        compiler_params=pltpu.CompilerParams(
            dimension_semantics=("parallel",),
            vmem_limit_bytes=_VMEM_LIMIT),
    )(x, w, b)
    mu, rstd = _combine_bn_stats(stats, p_real, tm, pad_row)
    return h, mu, rstd


def _proj_pass(h2, wz, tm):
    """taps = h2 @ wz  (ZeroConv per-tap channel projection, lane-dense bf16 out)."""
    p_pad, f = h2.shape
    kz = wz.shape[1]
    nt = p_pad // tm
    return pl.pallas_call(
        _matmul_kernel,
        grid=(nt,),
        in_specs=[pl.BlockSpec((tm, f), lambda i: (i, 0)),
                  pl.BlockSpec((f, kz), lambda i: (0, 0))],
        out_specs=pl.BlockSpec((tm, kz), lambda i: (i, 0)),
        out_shape=jax.ShapeDtypeStruct((p_pad, kz), jnp.bfloat16),
        compiler_params=pltpu.CompilerParams(
            dimension_semantics=("parallel",),
            vmem_limit_bytes=_VMEM_LIMIT),
    )(h2, wz)


# ----------------------------------------------------------------------------
# Plain-JAX glue
# ----------------------------------------------------------------------------
def _im2col3x3_bhwc(x_bhwc, pad_value=0.0):
    """(B, H, W, C) -> (B*H*W, C*9) patches, column order (channel, tap)."""
    b, h, w, c = x_bhwc.shape
    xp = jnp.pad(x_bhwc, ((0, 0), (1, 1), (1, 1), (0, 0)),
                 constant_values=pad_value)
    slabs = [xp[:, ky:ky + h, kx:kx + w, :] for ky in range(3) for kx in range(3)]
    pat = jnp.stack(slabs, axis=-1)                   # (B, H, W, C, 9)
    return pat.reshape(b * h * w, c * 9)


def _actnorm_data_init(x):
    # First-call ActNorm.initialize(): loc = -mean, scale_inv = std + 1e-6
    c = x.shape[1]
    flat = x.transpose(1, 0, 2, 3).reshape(c, -1)
    mean = jnp.mean(flat, axis=1)
    std = jnp.std(flat, axis=1, ddof=1)               # torch unbiased std
    return -mean, std + 1e-6


def init_flow_params(key, in_channel, height, width, cond_dim, filter_size=512):
    c = in_channel
    cf = c // 4
    ks = jax.random.split(key, 5)

    # InvConv2dLU: QR of a random matrix, LU-parameterized weight.
    w0 = jax.random.normal(ks[0], (c, c), jnp.float32)
    q, _ = jnp.linalg.qr(w0)
    p_mat, l_mat, u_mat = jax.scipy.linalg.lu(q)
    w_s = jnp.diag(u_mat)
    u_mask = jnp.triu(jnp.ones((c, c), jnp.float32), 1)
    l_mask = u_mask.T
    w_u = jnp.triu(u_mat, 1)
    s_sign = jnp.sign(w_s)
    w_s_log = jnp.log(jnp.abs(w_s))
    inv_weight = (p_mat
                  @ (l_mat * l_mask + jnp.eye(c, dtype=jnp.float32))
                  @ (w_u * u_mask + jnp.diag(s_sign * jnp.exp(w_s_log))))

    # net2 (lazily-built Linear in torch) — default torch Linear init bounds.
    m = height * width * cf
    bound = 1.0 / float(cond_dim) ** 0.5
    w2 = jax.random.uniform(ks[1], (m, cond_dim), jnp.float32, -bound, bound)
    b2 = jax.random.uniform(ks[2], (m,), jnp.float32, -bound, bound)

    # Coupling net convs.
    cin1 = c // 2 + cf
    conv1_w = 0.05 * jax.random.normal(ks[3], (filter_size, cin1, 3, 3),
                                       jnp.float32)
    conv1_b = jnp.zeros((filter_size,), jnp.float32)
    conv2_w = 0.05 * jax.random.normal(ks[4], (filter_size, filter_size, 1, 1),
                                       jnp.float32)
    conv2_b = jnp.zeros((filter_size,), jnp.float32)
    # ZeroConv2d: zero weight / bias / scale (torch init).
    zconv_w = jnp.zeros((c, filter_size, 3, 3), jnp.float32)
    zconv_b = jnp.zeros((c,), jnp.float32)
    zscale = jnp.zeros((c,), jnp.float32)

    return dict(inv_weight=inv_weight, w_s_log=w_s_log, w2=w2, b2=b2,
                conv1_w=conv1_w, conv1_b=conv1_b, conv2_w=conv2_w,
                conv2_b=conv2_b, zconv_w=zconv_w, zconv_b=zconv_b,
                zscale=zscale)


def prepare_flow_params(params):
    """One-time parameter re-layouts (hoisted out of flow_forward)."""
    f_ = params["conv1_w"].shape[0]
    cin1 = params["conv1_w"].shape[1]
    c = params["zconv_w"].shape[0]
    w1m = params["conv1_w"].reshape(f_, cin1 * 9).T.astype(jnp.bfloat16)
    b1 = params["conv1_b"].reshape(1, f_)
    w2m = params["conv2_w"].reshape(f_, f_).T                    # (Fin, Fout)
    # columns ordered (tap, out_channel)
    wz_all = params["zconv_w"].transpose(1, 2, 3, 0).reshape(f_, 9 * c)
    # pad-value-1 border contribution per (tap, out_channel)
    pad_contrib = params["zconv_w"].sum(axis=1).transpose(1, 2, 0).reshape(9, c)
    return dict(w1m=w1m, b1=b1, w2m=w2m, wz_all=wz_all, pad_contrib=pad_contrib)


def flow_forward(x, cond, params, *, tile_m=2048, return_hidden=False,
                 prepped=None):
    """Flow.forward: ActNorm -> InvConv2dLU -> cond AffineCoupling.

    tile_m: pixel-tile cap for the Pallas passes.  At F=512 a 2048-pixel tile
    uses ~9 MiB of VMEM (double-buffered, resident weights), comfortably under
    v7x's 64 MiB; _choose_tile still guarantees >= 2 tiles so both v7x
    TensorCores get work.  Pass prepped=prepare_flow_params(params) when the
    parameters are reused across calls.
    """
    b, c, h, w = x.shape
    p = b * h * w
    cf = c // 4
    chalf = c // 2
    f_ = params["conv1_w"].shape[0]
    tm, nt = _choose_tile(p, tile_m)
    p_pad = tm * nt

    if prepped is None:
        prepped = prepare_flow_params(params)
    w1m, b1 = prepped["w1m"], prepped["b1"]
    w2m, wz_all = prepped["w2m"], prepped["wz_all"]
    pad_contrib = prepped["pad_contrib"]

    # --- ActNorm data-dependent init (first-call semantics) + constant dets --
    loc, scale_inv = _actnorm_data_init(x)
    inv_scale = 1.0 / scale_inv
    logdet_an = h * w * jnp.sum(-jnp.log(jnp.abs(scale_inv)))
    det1 = h * w * jnp.sum(params["w_s_log"])

    # --- ActNorm + 1x1 inv-conv + cond linear: tiny (CxC / BxD) matmuls, -----
    # --- left to XLA on purpose (pure launch/DMA overhead as kernels). -------
    x_pix = x.transpose(0, 2, 3, 1).reshape(p, c)                  # pixel-major
    y_pix = ((x_pix + loc[None, :]) * inv_scale[None, :]) @ params["inv_weight"].T
    in_a_pix = y_pix[:, :chalf]                                    # (P, C/2)
    in_b_pix = y_pix[:, chalf:]                                    # (P, C/2)

    cond_lin = cond @ params["w2"].T + params["b2"]                # (B, cf*H*W)
    cond_pix = cond_lin.reshape(b, cf, h, w).transpose(0, 2, 3, 1)  # (B,H,W,cf)

    # --- Pass 1: conv3x3 (im2col matmul) + LReLU + BN1 stats -----------------
    # bf16 cast BEFORE patch materialization (halves the patch-slab bytes).
    net_in = jnp.concatenate(
        [in_a_pix.reshape(b, h, w, chalf), cond_pix],
        axis=-1).astype(jnp.bfloat16)                              # (B,H,W,cin1)
    patches1 = _im2col3x3_bhwc(net_in)                             # (P, 9*cin1)
    if p_pad > p:
        patches1 = jnp.pad(patches1, ((0, p_pad - p), (0, 0)))
    # Padded (all-zero) rows come out of pass 1 as exactly lrelu(conv1_b).
    pad1 = _lrelu(params["conv1_b"])
    h1, mu1, rstd1 = _lrelu_bn_pass(patches1, w1m, b1, tm, p, pad1)

    # --- Pass 2: conv1x1 with BN1 folded into weights/bias + LReLU + BN2 -----
    w2_eff = (rstd1[:, None] * w2m).astype(jnp.bfloat16)
    b2_vec = params["conv2_b"] - (mu1 * rstd1) @ w2m               # (F,)
    pad2 = _lrelu(jnp.dot(pad1.astype(jnp.bfloat16)[None, :], w2_eff,
                          preferred_element_type=jnp.float32)[0] + b2_vec)
    h2, mu2, rstd2 = _lrelu_bn_pass(h1, w2_eff, b2_vec.reshape(1, f_), tm, p,
                                    pad2)

    # --- Pass 3: ZeroConv2d as a per-tap channel projection (no 9x im2col) ---
    wz_eff = rstd2[:, None] * wz_all                               # BN2 scale fold
    kz = _round_up(9 * c, 128)                                     # lane-dense out
    wz_pad = (jnp.zeros((f_, kz), jnp.float32)
              .at[:, :9 * c].set(wz_eff).astype(jnp.bfloat16))
    taps_raw = _proj_pass(h2, wz_pad, tm)                          # (P_pad,kz) bf16
    tap_shift = -(mu2 * rstd2) @ wz_all                            # BN2 shift fold
    taps = (taps_raw[:p, :9 * c].astype(jnp.float32).reshape(b, h, w, 9, c)
            + tap_shift.reshape(1, 1, 1, 9, c))

    # Spatial shift-and-sum of the tiny (P, 9*C) tap array; the pad-value-1
    # border of the ZeroConv shows up as a per-tap per-channel constant.
    z = jnp.zeros((b, h, w, c), jnp.float32)
    for tap in range(9):
        ky, kx = tap // 3, tap % 3
        pc = pad_contrib[tap]
        slab = jnp.pad(taps[..., tap, :] - pc,
                       ((0, 0), (1, 1), (1, 1), (0, 0)))
        z = z + slab[:, ky:ky + h, kx:kx + w, :] + pc
    z = (z + params["zconv_b"]) * jnp.exp(params["zscale"] * 3.0)

    # --- Affine coupling + per-batch logdet (tiny (P, C) epilogue, XLA) ------
    log_s = jnp.tanh(z[..., :chalf])
    t = z[..., chalf:]
    out_b = (in_b_pix.reshape(b, h, w, chalf) + t) * jnp.exp(log_s)
    det2 = jnp.sum(log_s, axis=(1, 2, 3))                          # (B,)

    out = jnp.concatenate([in_a_pix.reshape(b, h, w, chalf), out_b], axis=-1)
    out = out.transpose(0, 3, 1, 2)                                # back to NCHW
    logdet = logdet_an + det1 + det2

    if not return_hidden:
        return out, logdet

    # BN2-normalized trunk activation (debug/parity only; gated because the
    # f32 (B, 512, H, W) write is the largest single HBM write outside the
    # main passes).
    h2n = (h2[:p].astype(jnp.float32) - mu2) * rstd2
    h2n_nchw = h2n.reshape(b, h, w, f_).transpose(0, 3, 1, 2)
    return out, logdet, h2n_nchw


# ----------------------------------------------------------------------------
# Pure-JAX reference (correctness check only)
# ----------------------------------------------------------------------------
def flow_reference(x, cond, params):
    b, c, h, w = x.shape
    hi = lax.Precision.HIGHEST
    dn = ("NCHW", "OIHW", "NCHW")
    loc, scale_inv = _actnorm_data_init(x)
    an = (x + loc.reshape(1, c, 1, 1)) / scale_inv.reshape(1, c, 1, 1)
    logdet = h * w * jnp.sum(-jnp.log(jnp.abs(scale_inv)))
    y = lax.conv_general_dilated(an, params["inv_weight"][:, :, None, None],
                                 (1, 1), "VALID", dimension_numbers=dn,
                                 precision=hi)
    det1 = h * w * jnp.sum(params["w_s_log"])
    in_a, in_b = y[:, :c // 2], y[:, c // 2:]
    cf = c // 4
    cond_t = (jnp.dot(cond, params["w2"].T, precision=hi)
              + params["b2"]).reshape(b, cf, h, w)
    net_in = jnp.concatenate([in_a, cond_t], axis=1)

    def lrelu(v):
        return jnp.where(v >= 0.0, v, 0.1 * v)

    def bn(v):
        mu = v.mean(axis=(0, 2, 3), keepdims=True)
        var = ((v - mu) ** 2).mean(axis=(0, 2, 3), keepdims=True)
        return (v - mu) / jnp.sqrt(var + 1e-5)

    hh = lax.conv_general_dilated(net_in, params["conv1_w"], (1, 1),
                                  ((1, 1), (1, 1)), dimension_numbers=dn,
                                  precision=hi) + params["conv1_b"].reshape(1, -1, 1, 1)
    hh = bn(lrelu(hh))
    hh = lax.conv_general_dilated(hh, params["conv2_w"], (1, 1), "VALID",
                                  dimension_numbers=dn,
                                  precision=hi) + params["conv2_b"].reshape(1, -1, 1, 1)
    h2 = bn(lrelu(hh))
    hp = jnp.pad(h2, ((0, 0), (0, 0), (1, 1), (1, 1)), constant_values=1.0)
    z = lax.conv_general_dilated(hp, params["zconv_w"], (1, 1), "VALID",
                                 dimension_numbers=dn,
                                 precision=hi) + params["zconv_b"].reshape(1, -1, 1, 1)
    z = z * jnp.exp(params["zscale"].reshape(1, -1, 1, 1) * 3.0)
    log_s = jnp.tanh(z[:, :c // 2])
    t = z[:, c // 2:]
    out_b = (in_b + t) * jnp.exp(log_s)
    det2 = jnp.sum(log_s.reshape(b, -1), axis=1)
    out = jnp.concatenate([in_a, out_b], axis=1)
    return out, logdet + det1 + det2, h2


if __name__ == "__main__":
    key = jax.random.PRNGKey(0)
    B, C, H, W, COND_DIM = 2, 4, 16, 16, 8
    kx, kc, kp, kz = jax.random.split(key, 4)
    x = jax.random.normal(kx, (B, C, H, W), jnp.float32)
    cond = jax.random.normal(kc, (B, COND_DIM), jnp.float32)
    params = init_flow_params(kp, C, H, W, COND_DIM)

    # Perturb the ZeroConv params away from the torch zero-init so the
    # zero-conv / affine / logdet path is actually exercised by the check.
    kz1, kz2, kz3 = jax.random.split(kz, 3)
    params["zconv_w"] = 0.01 * jax.random.normal(kz1, params["zconv_w"].shape,
                                                 jnp.float32)
    params["zconv_b"] = 0.01 * jax.random.normal(kz2, params["zconv_b"].shape,
                                                 jnp.float32)
    params["zscale"] = 0.01 * jax.random.normal(kz3, params["zscale"].shape,
                                                jnp.float32)

    prepped = prepare_flow_params(params)
    ref_out, ref_logdet, ref_h2 = flow_reference(x, cond, params)

    # Config 1: default tile cap -> 2 tiles of 256 pixels (cross-tile BN,
    #           both v7x TCs get work, no padding).
    # Config 2: tile_m=192 -> 3 tiles, P padded 512 -> 576 (exercises the
    #           padded-row BN-correction path).
    for tm_cfg in (None, 192):
        kwargs = {} if tm_cfg is None else {"tile_m": tm_cfg}
        out, logdet, h2 = flow_forward(x, cond, params, prepped=prepped,
                                       return_hidden=True, **kwargs)
        out, logdet, h2 = jax.block_until_ready((out, logdet, h2))
        assert out.shape == (B, C, H, W) and logdet.shape == (B,)
        # Kernel path uses bf16 MXU operands (per perf guidance) vs. the f32
        # HIGHEST-precision reference, hence the looser tolerances; logdet is
        # a sum of ~H*W*C/2 O(1) terms, so it gets a wider absolute tolerance.
        assert jnp.allclose(h2, ref_h2, rtol=4e-2, atol=4e-2)
        assert jnp.allclose(out, ref_out, rtol=4e-2, atol=4e-2)
        assert jnp.allclose(logdet, ref_logdet, rtol=4e-2, atol=5e-1)

    print("KERNEL_OK")
</pallas_src>

<mosaic_0001>
module attributes {stable_mosaic.version = 11 : i64} {
  func.func @_matmul_bias_lrelu_stats_kernel(%arg0: i32, %arg1: memref<256x27xbf16, #tpu.memory_space<vmem>>, %arg2: memref<27x512xbf16, #tpu.memory_space<vmem>>, %arg3: memref<1x512xf32, #tpu.memory_space<vmem>>, %arg4: memref<256x512xbf16, #tpu.memory_space<vmem>>, %arg5: memref<1x8x512xf32, #tpu.memory_space<vmem>>) attributes {dimension_semantics = [#tpu.dimension_semantics<parallel>], iteration_bounds = array<i64: 2>, scalar_prefetch = 0 : i64, scratch_operands = 0 : i64, tpu.core_type = #tpu.core_type<tc>, window_params = [{transform_indices = @transform_0, window_bounds = array<i64: 256, 27>}, {pipeline_mode = #tpu.pipeline_mode<synchronous>, transform_indices = @transform_1, window_bounds = array<i64: 27, 512>}, {pipeline_mode = #tpu.pipeline_mode<synchronous>, transform_indices = @transform_2, window_bounds = array<i64: 1, 512>}, {transform_indices = @transform_3, window_bounds = array<i64: 256, 512>}, {transform_indices = @transform_4, window_bounds = array<i64: 1, 8, 512>}]} {
    %c0 = arith.constant 0 : index
    %c0_0 = arith.constant 0 : index
    %0 = vector.load %arg1[%c0, %c0_0] : memref<256x27xbf16, #tpu.memory_space<vmem>>, vector<256x27xbf16>
    %c0_1 = arith.constant 0 : index
    %c0_2 = arith.constant 0 : index
    %1 = vector.load %arg2[%c0_1, %c0_2] : memref<27x512xbf16, #tpu.memory_space<vmem>>, vector<27x512xbf16>
    %cst = arith.constant dense<0.000000e+00> : vector<256x512xf32>
    %2 = tpu.matmul %0, %1, %cst {dimension_numbers = #tpu.dot_dimension_numbers<[1], [0], [0], [1], [0, 0, 1, 1], [], []>} : vector<256x27xbf16>, vector<27x512xbf16>, vector<256x512xf32> -> vector<256x512xf32>
    %c0_3 = arith.constant 0 : index
    %c0_4 = arith.constant 0 : index
    %3 = vector.load %arg3[%c0_3, %c0_4] : memref<1x512xf32, #tpu.memory_space<vmem>>, vector<1x512xf32>
    %4 = vector.broadcast %3 : vector<1x512xf32> to vector<256x512xf32>
    %5 = arith.addf %2, %4 : vector<256x512xf32>
    %cst_5 = arith.constant 0.000000e+00 : f32
    %6 = vector.broadcast %cst_5 : f32 to vector<256x512xf32>
    %7 = arith.cmpf oge, %5, %6 : vector<256x512xf32>
    %cst_6 = arith.constant 1.000000e-01 : f32
    %8 = vector.broadcast %cst_6 : f32 to vector<256x512xf32>
    %9 = arith.mulf %8, %5 : vector<256x512xf32>
    %10 = arith.select %7, %5, %9 : vector<256x512xi1>, vector<256x512xf32>
    %11 = arith.truncf %10 : vector<256x512xf32> to vector<256x512xbf16>
    %c0_7 = arith.constant 0 : index
    %c0_8 = arith.constant 0 : index
    %12 = vector.load %arg4[%c0_7, %c0_8] : memref<256x512xbf16, #tpu.memory_space<vmem>>, vector<256x512xbf16>
    tpu.vector_store %arg4[%c0_7, %c0_8], %11 {strides = array<i32>} : memref<256x512xbf16, #tpu.memory_space<vmem>>, vector<256x512xbf16>,
    %cst_9 = arith.constant dense<0.000000e+00> : vector<512xf32>
    %13 = vector.multi_reduction <add>, %10, %cst_9 [0] : vector<256x512xf32> to vector<512xf32>
    %14 = vector.shape_cast %13 : vector<512xf32> to vector<1x512xf32>
    %c0_10 = arith.constant 0 : index
    %c0_11 = arith.constant 0 : index
    %c0_12 = arith.constant 0 : index
    %15 = vector.load %arg5[%c0_10, %c0_11, %c0_12] : memref<1x8x512xf32, #tpu.memory_space<vmem>>, vector<1x1x512xf32>
    %16 = vector.shape_cast %15 : vector<1x1x512xf32> to vector<1x512xf32>
    %17 = vector.shape_cast %14 : vector<1x512xf32> to vector<1x1x512xf32>
    tpu.vector_store %arg5[%c0_10, %c0_11, %c0_12], %17 {strides = array<i32>} : memref<1x8x512xf32, #tpu.memory_space<vmem>>, vector<1x1x512xf32>,
    %18 = arith.mulf %10, %10 : vector<256x512xf32>
    %cst_13 = arith.constant dense<0.000000e+00> : vector<512xf32>
    %19 = vector.multi_reduction <add>, %18, %cst_13 [0] : vector<256x512xf32> to vector<512xf32>
    %20 = vector.shape_cast %19 : vector<512xf32> to vector<1x512xf32>
    %c0_14 = arith.constant 0 : index
    %c1 = arith.constant 1 : index
    %c0_15 = arith.constant 0 : index
    %21 = vector.load %arg5[%c0_14, %c1, %c0_15] : memref<1x8x512xf32, #tpu.memory_space<vmem>>, vector<1x1x512xf32>
    %22 = vector.shape_cast %21 : vector<1x1x512xf32> to vector<1x512xf32>
    %23 = vector.shape_cast %20 : vector<1x512xf32> to vector<1x1x512xf32>
    tpu.vector_store %arg5[%c0_14, %c1, %c0_15], %23 {strides = array<i32>} : memref<1x8x512xf32, #tpu.memory_space<vmem>>, vector<1x1x512xf32>,
    return
  }
  func.func @transform_0(%arg0: i32) -> (i32, i32) {
    %c0_i32 = arith.constant 0 : i32
    %c0_i32_0 = arith.constant 0 : i32
    return %arg0, %c0_i32 : i32, i32
  }
  func.func @transform_1(%arg0: i32) -> (i32, i32) {
    %c0_i32 = arith.constant 0 : i32
    %c0_i32_0 = arith.constant 0 : i32
    %c0_i32_1 = arith.constant 0 : i32
    return %c0_i32, %c0_i32_0 : i32, i32
  }
  func.func @transform_2(%arg0: i32) -> (i32, i32) {
    %c0_i32 = arith.constant 0 : i32
    %c0_i32_0 = arith.constant 0 : i32
    %c0_i32_1 = arith.constant 0 : i32
    return %c0_i32, %c0_i32_0 : i32, i32
  }
  func.func @transform_3(%arg0: i32) -> (i32, i32) {
    %c0_i32 = arith.constant 0 : i32
    %c0_i32_0 = arith.constant 0 : i32
    return %arg0, %c0_i32 : i32, i32
  }
  func.func @transform_4(%arg0: i32) -> (i32, i32, i32) {
    %c0_i32 = arith.constant 0 : i32
    %c0_i32_0 = arith.constant 0 : i32
    %c0_i32_1 = arith.constant 0 : i32
    return %arg0, %c0_i32, %c0_i32_0 : i32, i32, i32
  }
}

</mosaic_0001>

<bundles_post_ra>
// kernel: tpu_custom_call.1
= control target key start
LH: loop header
LB: loop body
LE: loop exit
PB: predicated region body
PF: predicated region fallthrough
CT: control target
= control target key end

     0   :  { %10 = vsyncpa [#allocation3], 0  ;;  %s2774_s0 = inlined_call_operand.vmem [shape: bf16[512,27], index: 0, kind: input, shape index: {}]   ;;  %s2775_s1 = inlined_call_operand.vmem [shape: bf16[27,512], index: 1, kind: input, shape index: {}]   ;;  %s2776_s2 = inlined_call_operand.vmem [shape: f32[1,512], index: 2, kind: input, shape index: {}]   ;;  %s2777_s3 = inlined_call_operand.hbm [shape: bf16[512,512], index: 3, kind: output, shape index: {0}]   ;;  %s2778_s4 = inlined_call_operand.hbm [shape: f32[2,8,512], index: 4, kind: output, shape index: {1}]  }
   0x1   :  { %12 = vsyncpa [#allocation3 + $0x1], 0 }
   0x2   :  { %13 = vsyncpa [#allocation5], 0 }
   0x3   :  { %15 = vsyncpa [#allocation5 + $0x1], 0  ;;  %s2276_s15 = smov 0   ;;  %s2278_s16 = smov 0  }
   0x4   :  { %s2280_s17 = smov 0   ;;  %s2282_s18 = smov 0  }
   0x5 LB: > { %s2297_s19 = sadd.s32 4294967295, %s2246_s18   ;;  %s1900_s20 = sadd.s32 4294967294, %s2246_s18   ;;  %s2246_s18 = sphi %s2282_s18, %s2784_s18   ;;  %s2242_s17 = sphi %s2280_s17, %s2783_s17   ;;  %s2238_s16 = sphi %s2278_s16, %s2782_s16   ;;  %s2234_s15 = sphi %s2276_s15, %s2781_s15  }
   0x6   : > { %s2301_s21 = sadd.s32 1, %s2246_s18   ;;  %s96_s22 = sadd.s32 1, %s2242_s17 }
   0x7   : > { %s93_s23 = ssub.s32 %s2246_s18, %s2301_s21  ;;  %p106_p0 = scmp.ne.s32.totalorder %s2242_s17, %s2238_s16 }
   0x8   : > { %p94_p1 = scmp.eq.s32.totalorder %s93_s23, 0  ;;  %p107_p2 = scmp.eq.s32.totalorder %s2297_s19, 1 }
   0x9   : > { %p112_p3 = scmp.ne.s32.totalorder %s2238_s16, %s2234_s15  ;;  %p113_p4 = scmp.eq.s32.totalorder %s1900_s20, 1 }
   0xa   : > { %s2312_s24 = scalar_select %p94_p1, %s2242_s17, %s96_s22  }
   0xb   : > { %p2314_p5 = por %p107_p2, %p106_p0  ;;  %p2318_p6 = por %p113_p4, %p112_p3 }
   0xc   : > { %p1903_p7 = scmp.ge.s32.totalorder %s2246_s18, 1  ;;  %p172_p8 = scmp.lt.s32.totalorder %s2246_s18, 3 }
   0xe   : > { %p173_p9 = pnand %p1903_p7, %p172_p8 }
   0xf   : > { %s2337_s9 = sshll.u32 (!%p173_p9), %s2297_s19, 5  ;;  %s2432_s8 = sand.u32 (!%p173_p9), 1, %s2238_s16  }
  0x10   : > { %176 = sbr.rel (%p173_p9) target bundleno = 449 (0x1c1), region = 32  ;;  %p204_p10 = scmp.lt.s32.totalorder (!%p173_p9), %s2337_s9, 63 }
  0x11   : > { %s1904_s10 = sshll.u32 (!%p173_p9), %s2432_s8, 9  ;;  %s2103_s12 = sshll.u32 (!%p173_p9), %s2297_s19, 9 }
  0x12   : > { %s2446_s11 = scalar_lea.vmem (!%p173_p9), [#allocation2], %s1904_s10  ;;  %s2715_s14 = scalar_lea.hbm (!%p173_p9), %s2777_s3, %s2103_s12 }
  0x13   : > { %s1787_s20 = sshll.u32 (!%p173_p9), %s2446_s11, 4  ;;  %s1789_s22 = sshll.u32 (!%p173_p9), %s2715_s14, 4  ;;  %s2720_s20 = int_to_ptr.vmem [resolvable:$true] %s1787_s20  ;;  %s2722_s22 = int_to_ptr.hbm [resolvable:$true] %s1789_s22 }
  0x14   : > { %s1769_s23 = scalar_lea.sflag (!%p173_p9), [#allocation3], %s2432_s8 }
  0x15   : > { %v1990_v0 = vld [vmem:[%s2775_s1 + $0x20] sm:$0xf]  ;;  %v2100_v1 = vld [vmem:[%s2775_s1 + $0x2c] sm:$0x30]  ;;  %vm426_vm0 = vcmask 1044480   ;;  %vm427_vm1 = vcmask 1045504  }
  0x16   : > { %v1991_v2 = vor.u32 %v2100_v1, %v1990_v0  ;;  %v2098_v3 = vld [vmem:[%s2775_s1 + $0x24] sm:$0xf]  ;;  %v1992_v4 = vld [vmem:[%s2775_s1 + $0x30] sm:$0x30]  ;;  %v2248_v5 = vmov 65535   ;;  %s205_s27 = scalar_select %p204_p10, %s2337_s9, 63 }
  0x17   : > { %v428_v6 = vsel %vm426_vm0, 4294967295, %v2248_v5  ;;  %v1995_v7 = vor.u32 %v2098_v3, %v1992_v4  ;;  %v1998_v8 = vld [vmem:[%s2775_s1 + $0x28] sm:$0xf]  ;;  %v2101_v9 = vld [vmem:[%s2775_s1 + $0x34] sm:$0x30]  ;;  %vm377_vm2 = vcmask 220160  }
  0x18   : > { %v429_v10 = vsel %vm427_vm1, %v428_v6, 0  ;;  %v1999_v11 = vor.u32 %v2101_v9, %v1998_v8  ;;  %v2099_v12 = vld [vmem:[%s2775_s1 + $0x2c] sm:$0xf]  ;;  %v2000_v13 = vld [vmem:[%s2775_s1 + $0x38] sm:$0x30]  ;;  %s1907_s28 = sshll.u32 %s205_s27, 2 }
  0x19   : > { %v431_v14 = vand.u32 %v1991_v2, %v429_v10  ;;  %v434_v15 = vand.u32 %v1995_v7, %v429_v10  ;;  %v2003_v16 = vor.u32 %v2099_v12, %v2000_v13  ;;  %v1974_v17 = vld [vmem:[%s2775_s1] sm:$0xf]  ;;  %v2096_v18 = vld [vmem:[%s2775_s1 + $0xc] sm:$0xf0]  ;;  %v2094_v19 = vld [vmem:[%s2775_s1 + $0x4] sm:$0xf]  ;;  %s2382_s5 = scalar_lea.vmem %s2774_s0, %s1907_s28 }
  0x1a   : > { %v437_v20 = vand.u32 %v1999_v11, %v429_v10  ;;  %v1976_v21 = vld [vmem:[%s2775_s1 + $0x10] sm:$0xf0]  ;;  %v1982_v22 = vld [vmem:[%s2775_s1 + $0x8] sm:$0xf]  ;;  %v2097_v23 = vld [vmem:[%s2775_s1 + $0x14] sm:$0xf0]  ;;  %v1975_v25 = vor.u32 %v2096_v18, %v1974_v17 }
  0x1b   : > { %448 = vmatpush.bf16.msra.mxu0 %v431_v14  ;;  %537 = vmatpush.bf16.msra.mxu1 %v434_v15  ;;  %v440_v24 = vand.u32 %v2003_v16, %v429_v10  ;;  %v1979_v26 = vor.u32 %v2094_v19, %v1976_v21  ;;  %v2095_v27 = vld [vmem:[%s2775_s1 + $0xc] sm:$0xf]  ;;  %v1984_v28 = vld [vmem:[%s2775_s1 + $0x18] sm:$0xf0]  ;;  %v1983_v29 = vor.u32 %v2097_v23, %v1982_v22  ;;  %v2078_v31 = vld [vmem:[%s2382_s5] sm:$0xff]  ;;  %s2166_s27 = sshra.s32 %s2722_s22, 4  ;;  %s2167_s27 = int_to_ptr.hbm [resolvable:$true] %s2166_s27 }
  0x1c   : > { %626 = vmatpush.bf16.msra.mxu2 %v437_v20  ;;  %v1987_v30 = vor.u32 %v2095_v27, %v1984_v28  ;;  %v2079_v32 = vld [vmem:[%s2382_s5 + $0x8] sm:$0xff]  ;;  %v2080_v33 = vld [vmem:[%s2382_s5 + $0x10] sm:$0xff]  ;;  %v2081_v34 = vld [vmem:[%s2382_s5 + $0x18] sm:$0xff]  ;;  %s2168_s28 = scalar_lea.hbm %s2167_s27, 512  ;;  %p2173_p0 = scmp.lt.s32.totalorder %s2167_s27, %s2777_s3 }
  0x1d   : > { %715 = vmatpush.bf16.msra.mxu3 %v440_v24  ;;  %v2082_v35 = vld [vmem:[%s2382_s5 + $0x20] sm:$0xff]  ;;  %v2083_v36 = vld [vmem:[%s2382_s5 + $0x28] sm:$0xff]  ;;  %v2084_v37 = vld [vmem:[%s2382_s5 + $0x30] sm:$0xff]  ;;  %p2169_p11 = scmp.ne.s32.totalorder %s2167_s27, %s2168_s28 }
  0x1e   : > { %v2085_v38 = vld [vmem:[%s2382_s5 + $0x38] sm:$0xff]  ;;  %v251_v39 = vld [vmem:[%s2776_s2] sm:$0xf]  ;;  %v2087_v12 = vld [vmem:[%s2382_s5 + $0x48] sm:$0xff] }
  0x1f   : > { %449 = vmatpush.bf16.msra.mxu0 %v1975_v25  ;;  %538 = vmatpush.bf16.msra.mxu1 %v1979_v26  ;;  %v2427_v40 = vperm.slane %v251_v39, 0  ;;  %v2429_v41 = vperm.slane %v251_v39, 1  ;;  %v2086_v42 = vld [vmem:[%s2382_s5 + $0x40] sm:$0xff]  ;;  %v2441_v49 = vperm.slane %v251_v39, 2  ;;  %v2444_v52 = vperm.slane %v251_v39, 3  ;;  %p2170_p12 = pnand %p2169_p11, %p2314_p5 }
  0x20   : > { %627 = vmatpush.bf16.msra.mxu2 %v1983_v29 }
  0x21   : > { %716 = vmatpush.bf16.msra.mxu3 %v1987_v30  ;;  %p2171_p13 = pneg %p2170_p12 }
  0x22   : > { %2004 = vmatmul.msk.bf16.vlgmr.msra.gmra.mxu0 %vm377_vm2, %v2078_v31  ;;  %2020 = vmatmul.msk.bf16.vlgmr.msra.gmra.mxu1 %vm377_vm2, %v2078_v31 }
  0x23   : > { %2036 = vmatmul.msk.bf16.vlgmr.msra.gmra.mxu2 %vm377_vm2, %v2078_v31 }
  0x24   : > { %2052 = vmatmul.msk.bf16.vlgmr.msra.gmra.mxu3 %vm377_vm2, %v2078_v31 }
  0x32   : > { %2005 = vmatmul.msk.bf16.gmra.mxu0 %vm377_vm2, %v2079_v32  ;;  %2021 = vmatmul.msk.bf16.gmra.mxu1 %vm377_vm2, %v2079_v32 }
  0x33   : > { %2037 = vmatmul.msk.bf16.gmra.mxu2 %vm377_vm2, %v2079_v32 }
  0x34   : > { %2053 = vmatmul.msk.bf16.gmra.mxu3 %vm377_vm2, %v2079_v32 }
  0x42   : > { %2006 = vmatmul.msk.bf16.gmra.mxu0 %vm377_vm2, %v2080_v33  ;;  %2022 = vmatmul.msk.bf16.gmra.mxu1 %vm377_vm2, %v2080_v33 }
  0x43   : > { %2038 = vmatmul.msk.bf16.gmra.mxu2 %vm377_vm2, %v2080_v33 }
  0x44   : > { %2054 = vmatmul.msk.bf16.gmra.mxu3 %vm377_vm2, %v2080_v33 }
  0x52   : > { %2007 = vmatmul.msk.bf16.gmra.mxu0 %vm377_vm2, %v2081_v34  ;;  %2023 = vmatmul.msk.bf16.gmra.mxu1 %vm377_vm2, %v2081_v34 }
  0x53   : > { %2039 = vmatmul.msk.bf16.gmra.mxu2 %vm377_vm2, %v2081_v34 }
  0x54   : > { %2055 = vmatmul.msk.bf16.gmra.mxu3 %vm377_vm2, %v2081_v34 }
  0x62   : > { %2008 = vmatmul.msk.bf16.gmra.mxu0 %vm377_vm2, %v2082_v35  ;;  %2024 = vmatmul.msk.bf16.gmra.mxu1 %vm377_vm2, %v2082_v35 }
  0x63   : > { %2040 = vmatmul.msk.bf16.gmra.mxu2 %vm377_vm2, %v2082_v35 }
  0x64   : > { %2056 = vmatmul.msk.bf16.gmra.mxu3 %vm377_vm2, %v2082_v35 }
  0x72   : > { %2009 = vmatmul.msk.bf16.gmra.mxu0 %vm377_vm2, %v2083_v36  ;;  %2025 = vmatmul.msk.bf16.gmra.mxu1 %vm377_vm2, %v2083_v36 }
  0x73   : > { %2041 = vmatmul.msk.bf16.gmra.mxu2 %vm377_vm2, %v2083_v36 }
  0x74   : > { %2057 = vmatmul.msk.bf16.gmra.mxu3 %vm377_vm2, %v2083_v36 }
  0x82   : > { %2010 = vmatmul.msk.bf16.gmra.mxu0 %vm377_vm2, %v2084_v37  ;;  %2026 = vmatmul.msk.bf16.gmra.mxu1 %vm377_vm2, %v2084_v37 }
  0x83   : > { %2042 = vmatmul.msk.bf16.gmra.mxu2 %vm377_vm2, %v2084_v37 }
  0x84   : > { %2058 = vmatmul.msk.bf16.gmra.mxu3 %vm377_vm2, %v2084_v37 }
  0x92   : > { %2011 = vmatmul.msk.bf16.gmra.mxu0 %vm377_vm2, %v2085_v38  ;;  %2027 = vmatmul.msk.bf16.gmra.mxu1 %vm377_vm2, %v2085_v38 }
  0x93   : > { %2043 = vmatmul.msk.bf16.gmra.mxu2 %vm377_vm2, %v2085_v38 }
  0x94   : > { %2059 = vmatmul.msk.bf16.gmra.mxu3 %vm377_vm2, %v2085_v38 }
  0x9f   : > { %v451_v43 = vpop.f32.mrf.mxu0  ;;  %v540_v44 = vpop.f32.mrf.mxu1 }
  0xa0   : > { %v452_v45 = vadd.f32 %v451_v43, %v2427_v40  ;;  %v541_v46 = vadd.f32 %v540_v44, %v2429_v41 }
  0xa2   : > { %vm798_vm3 = vcmp.ge.f32.partialorder %v452_v45, 0.0  ;;  %v926_v47 = vmul.f32 0.1, %v452_v45  ;;  %vm799_vm4 = vcmp.ge.f32.partialorder %v541_v46, 0.0  ;;  %v927_v48 = vmul.f32 0.1, %v541_v46  ;;  %2012 = vmatmul.msk.bf16.gmra.mxu0 %vm377_vm2, %v2086_v42  ;;  %2028 = vmatmul.msk.bf16.gmra.mxu1 %vm377_vm2, %v2086_v42 }
  0xa3   : > { %2044 = vmatmul.msk.bf16.gmra.mxu2 %vm377_vm2, %v2086_v42 }
  0xa4   : > { %v1054_v50 = vsel %vm798_vm3, %v452_v45, %v926_v47  ;;  %v1055_v51 = vsel %vm799_vm4, %v541_v46, %v927_v48  ;;  %2060 = vmatmul.msk.bf16.gmra.mxu3 %vm377_vm2, %v2086_v42 }
  0xa5   : > { %v1182_v53 = vpack.c.bf16 %v1055_v51, %v1054_v50  ;;  %v1478_v5 = vmul.f32 %v1054_v50, %v1054_v50  ;;  %v1479_v9 = vmul.f32 %v1055_v51, %v1055_v51 }
  0xa6   : > { %v629_v54 = vpop.f32.mrf.mxu2 }
  0xa7   : > { %1246 = vst [vmem:[%s2446_s11] sm:$0xff] %v1182_v53  ;;  %v630_v55 = vadd.f32 %v629_v54, %v2441_v49  ;;  %v718_v56 = vpop.f32.mrf.mxu3  ;;  %v453_v57 = vpop.f32.mrf.mxu0 }
  0xa8   : > { %v719_v58 = vadd.f32 %v718_v56, %v2444_v52  ;;  %v454_v59 = vadd.f32 %v453_v57, %v2427_v40  ;;  %v542_v60 = vpop.f32.mrf.mxu1 }
  0xa9   : > { %vm800_vm5 = vcmp.ge.f32.partialorder %v630_v55, 0.0  ;;  %v928_v61 = vmul.f32 0.1, %v630_v55  ;;  %v543_v62 = vadd.f32 %v542_v60, %v2429_v41 }
  0xaa   : > { %vm801_vm6 = vcmp.ge.f32.partialorder %v719_v58, 0.0  ;;  %v929_v63 = vmul.f32 0.1, %v719_v58  ;;  %vm802_vm7 = vcmp.ge.f32.partialorder %v454_v59, 0.0  ;;  %v930_v0 = vmul.f32 0.1, %v454_v59 }
  0xab   : > { %v1056_v1 = vsel %vm800_vm5, %v630_v55, %v928_v61  ;;  %vm803_vm8 = vcmp.ge.f32.partialorder %v543_v62, 0.0  ;;  %v931_v2 = vmul.f32 0.1, %v543_v62 }
  0xac   : > { %v1057_v3 = vsel %vm801_vm6, %v719_v58, %v929_v63  ;;  %v1058_v4 = vsel %vm802_vm7, %v454_v59, %v930_v0  ;;  %v1480_v29 = vmul.f32 %v1056_v1, %v1056_v1 }
  0xad   : > { %v1183_v6 = vpack.c.bf16 %v1057_v3, %v1056_v1  ;;  %v1310_v7 = vadd.f32 %v1058_v4, %v1054_v50  ;;  %v1482_v8 = vmul.f32 %v1058_v4, %v1058_v4  ;;  %v1059_v10 = vsel %vm803_vm8, %v543_v62, %v931_v2 }
  0xae   : > { %v631_v11 = vpop.f32.mrf.mxu2  ;;  %v1184_v14 = vpack.c.bf16 %v1059_v10, %v1058_v4  ;;  %v1347_v15 = vadd.f32 %v1059_v10, %v1055_v51  ;;  %v1483_v16 = vmul.f32 %v1059_v10, %v1059_v10  ;;  %v1481_v36 = vmul.f32 %v1057_v3, %v1057_v3 }
  0xaf   : > { %1247 = vst [vmem:[%s2446_s11 + $0x8] sm:$0xff] %v1183_v6  ;;  %v1606_v13 = vadd.f32 %v1482_v8, %v1478_v5  ;;  %v720_v17 = vpop.f32.mrf.mxu3  ;;  %v456_v18 = vpop.f32.mrf.mxu0  ;;  %v632_v19 = vadd.f32 %v631_v11, %v2441_v49  ;;  %v2088_v11 = vld [vmem:[%s2382_s5 + $0x50] sm:$0xff] }
  0xb0   : > { %v721_v20 = vadd.f32 %v720_v17, %v2444_v52  ;;  %v457_v21 = vadd.f32 %v456_v18, %v2427_v40  ;;  %v545_v22 = vpop.f32.mrf.mxu1  ;;  %1248 = vst [vmem:[%s2446_s11 + $0x10] sm:$0xff] %v1184_v14  ;;  %v1643_v23 = vadd.f32 %v1483_v16, %v1479_v9 }
  0xb1   : > { %v546_v24 = vadd.f32 %v545_v22, %v2429_v41  ;;  %vm804_vm9 = vcmp.ge.f32.partialorder %v632_v19, 0.0  ;;  %v932_v25 = vmul.f32 0.1, %v632_v19 }
  0xb2   : > { %vm805_vm10 = vcmp.ge.f32.partialorder %v721_v20, 0.0  ;;  %v933_v26 = vmul.f32 0.1, %v721_v20  ;;  %2013 = vmatmul.msk.bf16.gmra.mxu0 %vm377_vm2, %v2087_v12  ;;  %2029 = vmatmul.msk.bf16.gmra.mxu1 %vm377_vm2, %v2087_v12  ;;  %vm806_vm11 = vcmp.ge.f32.partialorder %v457_v21, 0.0  ;;  %v934_v27 = vmul.f32 0.1, %v457_v21 }
  0xb3   : > { %vm807_vm12 = vcmp.ge.f32.partialorder %v546_v24, 0.0  ;;  %v935_v28 = vmul.f32 0.1, %v546_v24  ;;  %2045 = vmatmul.msk.bf16.gmra.mxu2 %vm377_vm2, %v2087_v12  ;;  %v1060_v30 = vsel %vm804_vm9, %v632_v19, %v932_v25 }
  0xb4   : > { %v1061_v31 = vsel %vm805_vm10, %v721_v20, %v933_v26  ;;  %2061 = vmatmul.msk.bf16.gmra.mxu3 %vm377_vm2, %v2087_v12  ;;  %v1384_v32 = vadd.f32 %v1060_v30, %v1056_v1  ;;  %v1484_v33 = vmul.f32 %v1060_v30, %v1060_v30  ;;  %v1062_v38 = vsel %vm806_vm11, %v457_v21, %v934_v27 }
  0xb5   : > { %v1185_v34 = vpack.c.bf16 %v1061_v31, %v1060_v30  ;;  %v1421_v35 = vadd.f32 %v1061_v31, %v1057_v3  ;;  %v1485_v37 = vmul.f32 %v1061_v31, %v1061_v31  ;;  %v1063_v39 = vsel %vm807_vm12, %v546_v24, %v935_v28 }
  0xb6   : > { %v634_v42 = vpop.f32.mrf.mxu2  ;;  %v1680_v43 = vadd.f32 %v1484_v33, %v1480_v29  ;;  %v1311_v44 = vadd.f32 %v1310_v7, %v1062_v38  ;;  %v1486_v45 = vmul.f32 %v1062_v38, %v1062_v38  ;;  %v1186_v46 = vpack.c.bf16 %v1063_v39, %v1062_v38 }
  0xb7   : > { %1249 = vst [vmem:[%s2446_s11 + $0x18] sm:$0xff] %v1185_v34  ;;  %v723_v47 = vpop.f32.mrf.mxu3  ;;  %v458_v48 = vpop.f32.mrf.mxu0  ;;  %v1717_v50 = vadd.f32 %v1485_v37, %v1481_v36  ;;  %v1348_v51 = vadd.f32 %v1347_v15, %v1063_v39  ;;  %v1487_v53 = vmul.f32 %v1063_v39, %v1063_v39  ;;  %v635_v54 = vadd.f32 %v634_v42, %v2441_v49 }
  0xb8   : > { %v547_v55 = vpop.f32.mrf.mxu1  ;;  %v1607_v56 = vadd.f32 %v1606_v13, %v1486_v45  ;;  %1250 = vst [vmem:[%s2446_s11 + $0x20] sm:$0xff] %v1186_v46  ;;  %v724_v57 = vadd.f32 %v723_v47, %v2444_v52  ;;  %v459_v58 = vadd.f32 %v458_v48, %v2427_v40 }
  0xb9   : > { %v548_v59 = vadd.f32 %v547_v55, %v2429_v41  ;;  %v1644_v60 = vadd.f32 %v1643_v23, %v1487_v53  ;;  %vm808_vm13 = vcmp.ge.f32.partialorder %v635_v54, 0.0  ;;  %v936_v61 = vmul.f32 0.1, %v635_v54 }
  0xba   : > { %vm809_vm14 = vcmp.ge.f32.partialorder %v724_v57, 0.0  ;;  %v937_v62 = vmul.f32 0.1, %v724_v57  ;;  %vm810_vm15 = vcmp.ge.f32.partialorder %v459_v58, 0.0  ;;  %v938_v63 = vmul.f32 0.1, %v459_v58 }
  0xbb   : > { %v1064_v0 = vsel %vm808_vm13, %v635_v54, %v936_v61  ;;  %vm811_vm0 = vcmp.ge.f32.partialorder %v548_v59, 0.0  ;;  %v939_v1 = vmul.f32 0.1, %v548_v59 }
  0xbc   : > { %v1385_v2 = vadd.f32 %v1384_v32, %v1064_v0  ;;  %v1488_v3 = vmul.f32 %v1064_v0, %v1064_v0  ;;  %v1065_v4 = vsel %vm809_vm14, %v724_v57, %v937_v62  ;;  %v1066_v5 = vsel %vm810_vm15, %v459_v58, %v938_v63 }
  0xbd   : > { %v1187_v6 = vpack.c.bf16 %v1065_v4, %v1064_v0  ;;  %v1422_v7 = vadd.f32 %v1421_v35, %v1065_v4  ;;  %v1489_v8 = vmul.f32 %v1065_v4, %v1065_v4  ;;  %v1312_v9 = vadd.f32 %v1311_v44, %v1066_v5 }
  0xbe   : > { %v636_v10 = vpop.f32.mrf.mxu2  ;;  %v1681_v12 = vadd.f32 %v1680_v43, %v1488_v3  ;;  %v1490_v13 = vmul.f32 %v1066_v5, %v1066_v5  ;;  %v1067_v14 = vsel %vm811_vm0, %v548_v59, %v939_v1 }
  0xbf   : > { %v637_v15 = vadd.f32 %v636_v10, %v2441_v49  ;;  %v725_v16 = vpop.f32.mrf.mxu3  ;;  %v461_v17 = vpop.f32.mrf.mxu0  ;;  %1251 = vst [vmem:[%s2446_s11 + $0x28] sm:$0xff] %v1187_v6  ;;  %v1718_v18 = vadd.f32 %v1717_v50, %v1489_v8  ;;  %v1188_v19 = vpack.c.bf16 %v1067_v14, %v1066_v5  ;;  %v1349_v20 = vadd.f32 %v1348_v51, %v1067_v14  ;;  %v2089_v8 = vld [vmem:[%s2382_s5 + $0x58] sm:$0xff] }
  0xc0   : > { %v1491_v21 = vmul.f32 %v1067_v14, %v1067_v14  ;;  %v550_v22 = vpop.f32.mrf.mxu1  ;;  %v1608_v23 = vadd.f32 %v1607_v56, %v1490_v13  ;;  %v726_v25 = vadd.f32 %v725_v16, %v2444_v52  ;;  %v462_v27 = vadd.f32 %v461_v17, %v2427_v40 }
  0xc1   : > { %vm812_vm1 = vcmp.ge.f32.partialorder %v637_v15, 0.0  ;;  %v940_v24 = vmul.f32 0.1, %v637_v15  ;;  %1252 = vst [vmem:[%s2446_s11 + $0x30] sm:$0xff] %v1188_v19  ;;  %v551_v28 = vadd.f32 %v550_v22, %v2429_v41 }
  0xc2   : > { %v1645_v26 = vadd.f32 %v1644_v60, %v1491_v21  ;;  %2014 = vmatmul.msk.bf16.gmra.mxu0 %vm377_vm2, %v2088_v11  ;;  %2030 = vmatmul.msk.bf16.gmra.mxu1 %vm377_vm2, %v2088_v11  ;;  %vm813_vm3 = vcmp.ge.f32.partialorder %v726_v25, 0.0  ;;  %v941_v30 = vmul.f32 0.1, %v726_v25  ;;  %vm814_vm4 = vcmp.ge.f32.partialorder %v462_v27, 0.0 }
  0xc3   : > { %v1068_v29 = vsel %vm812_vm1, %v637_v15, %v940_v24  ;;  %2046 = vmatmul.msk.bf16.gmra.mxu2 %vm377_vm2, %v2088_v11  ;;  %v942_v33 = vmul.f32 0.1, %v462_v27  ;;  %vm815_vm5 = vcmp.ge.f32.partialorder %v551_v28, 0.0  ;;  %v943_v35 = vmul.f32 0.1, %v551_v28 }
  0xc4   : > { %v1386_v31 = vadd.f32 %v1385_v2, %v1068_v29  ;;  %v1492_v32 = vmul.f32 %v1068_v29, %v1068_v29  ;;  %2062 = vmatmul.msk.bf16.gmra.mxu3 %vm377_vm2, %v2088_v11  ;;  %v1069_v34 = vsel %vm813_vm3, %v726_v25, %v941_v30 }
  0xc5   : > { %v1189_v37 = vpack.c.bf16 %v1069_v34, %v1068_v29  ;;  %v1423_v38 = vadd.f32 %v1422_v7, %v1069_v34  ;;  %v1493_v39 = vmul.f32 %v1069_v34, %v1069_v34  ;;  %v1070_v43 = vsel %vm814_vm4, %v462_v27, %v942_v33 }
  0xc6   : > { %v1682_v36 = vadd.f32 %v1681_v12, %v1492_v32  ;;  %v639_v42 = vpop.f32.mrf.mxu2  ;;  %v1071_v44 = vsel %vm815_vm5, %v551_v28, %v943_v35  ;;  %v1313_v50 = vadd.f32 %v1312_v9, %v1070_v43  ;;  %v1494_v51 = vmul.f32 %v1070_v43, %v1070_v43 }
  0xc7   : > { %v640_v45 = vadd.f32 %v639_v42, %v2441_v49  ;;  %v728_v46 = vpop.f32.mrf.mxu3  ;;  %v463_v47 = vpop.f32.mrf.mxu0  ;;  %1253 = vst [vmem:[%s2446_s11 + $0x38] sm:$0xff] %v1189_v37  ;;  %v1719_v48 = vadd.f32 %v1718_v18, %v1493_v39  ;;  %v1190_v53 = vpack.c.bf16 %v1071_v44, %v1070_v43  ;;  %v1350_v55 = vadd.f32 %v1349_v20, %v1071_v44 }
  0xc8   : > { %v552_v54 = vpop.f32.mrf.mxu1  ;;  %v1495_v56 = vmul.f32 %v1071_v44, %v1071_v44  ;;  %v1609_v58 = vadd.f32 %v1608_v23, %v1494_v51  ;;  %v729_v59 = vadd.f32 %v728_v46, %v2444_v52  ;;  %v464_v60 = vadd.f32 %v463_v47, %v2427_v40 }
  0xc9   : > { %vm816_vm6 = vcmp.ge.f32.partialorder %v640_v45, 0.0  ;;  %v944_v57 = vmul.f32 0.1, %v640_v45  ;;  %1254 = vst [vmem:[%s2446_s11 + $0x40] sm:$0xff] %v1190_v53  ;;  %v553_v61 = vadd.f32 %v552_v54, %v2429_v41 }
  0xca   : > { %v1646_v62 = vadd.f32 %v1645_v26, %v1495_v56  ;;  %vm817_vm7 = vcmp.ge.f32.partialorder %v729_v59, 0.0  ;;  %v945_v2 = vmul.f32 0.1, %v729_v59  ;;  %vm818_vm8 = vcmp.ge.f32.partialorder %v464_v60, 0.0 }
  0xcb   : > { %v1072_v63 = vsel %vm816_vm6, %v640_v45, %v944_v57  ;;  %v946_v3 = vmul.f32 0.1, %v464_v60  ;;  %vm819_vm9 = vcmp.ge.f32.partialorder %v553_v61, 0.0  ;;  %v947_v4 = vmul.f32 0.1, %v553_v61 }
  0xcc   : > { %v1387_v0 = vadd.f32 %v1386_v31, %v1072_v63  ;;  %v1496_v1 = vmul.f32 %v1072_v63, %v1072_v63  ;;  %v1073_v6 = vsel %vm817_vm7, %v729_v59, %v945_v2 }
  0xcd   : > { %v1191_v9 = vpack.c.bf16 %v1073_v6, %v1072_v63  ;;  %v1424_v10 = vadd.f32 %v1423_v38, %v1073_v6  ;;  %v1497_v11 = vmul.f32 %v1073_v6, %v1073_v6  ;;  %v1074_v12 = vsel %vm818_vm8, %v464_v60, %v946_v3 }
  0xce   : > { %v1683_v5 = vadd.f32 %v1682_v36, %v1496_v1  ;;  %v641_v7 = vpop.f32.mrf.mxu2  ;;  %v1314_v15 = vadd.f32 %v1313_v50, %v1074_v12  ;;  %v1498_v16 = vmul.f32 %v1074_v12, %v1074_v12  ;;  %v1075_v17 = vsel %vm819_vm9, %v553_v61, %v947_v4 }
  0xcf   : > { %v730_v13 = vpop.f32.mrf.mxu3  ;;  %v466_v14 = vpop.f32.mrf.mxu0  ;;  %v642_v18 = vadd.f32 %v641_v7, %v2441_v49  ;;  %1255 = vst [vmem:[%s2446_s11 + $0x48] sm:$0xff] %v1191_v9  ;;  %v1720_v20 = vadd.f32 %v1719_v48, %v1497_v11  ;;  %v1192_v21 = vpack.c.bf16 %v1075_v17, %v1074_v12  ;;  %v1351_v22 = vadd.f32 %v1350_v55, %v1075_v17 }
  0xd0   : > { %v555_v19 = vpop.f32.mrf.mxu1  ;;  %v1499_v23 = vmul.f32 %v1075_v17, %v1075_v17  ;;  %v1610_v24 = vadd.f32 %v1609_v58, %v1498_v16  ;;  %v731_v26 = vadd.f32 %v730_v13, %v2444_v52  ;;  %v467_v28 = vadd.f32 %v466_v14, %v2427_v40 }
  0xd1   : > { %vm820_vm10 = vcmp.ge.f32.partialorder %v642_v18, 0.0  ;;  %v948_v25 = vmul.f32 0.1, %v642_v18  ;;  %1256 = vst [vmem:[%s2446_s11 + $0x50] sm:$0xff] %v1192_v21  ;;  %v556_v29 = vadd.f32 %v555_v19, %v2429_v41 }
  0xd2   : > { %2015 = vmatmul.msk.bf16.gmra.mxu0 %vm377_vm2, %v2089_v8  ;;  %2031 = vmatmul.msk.bf16.gmra.mxu1 %vm377_vm2, %v2089_v8  ;;  %v1647_v27 = vadd.f32 %v1646_v62, %v1499_v23  ;;  %vm821_vm11 = vcmp.ge.f32.partialorder %v731_v26, 0.0  ;;  %v949_v31 = vmul.f32 0.1, %v731_v26  ;;  %vm822_vm12 = vcmp.ge.f32.partialorder %v467_v28, 0.0 }
  0xd3   : > { %2047 = vmatmul.msk.bf16.gmra.mxu2 %vm377_vm2, %v2089_v8  ;;  %v1076_v30 = vsel %vm820_vm10, %v642_v18, %v948_v25  ;;  %v950_v34 = vmul.f32 0.1, %v467_v28  ;;  %vm823_vm13 = vcmp.ge.f32.partialorder %v556_v29, 0.0  ;;  %v951_v36 = vmul.f32 0.1, %v556_v29 }
  0xd4   : > { %2063 = vmatmul.msk.bf16.gmra.mxu3 %vm377_vm2, %v2089_v8  ;;  %v1388_v32 = vadd.f32 %v1387_v0, %v1076_v30  ;;  %v1500_v33 = vmul.f32 %v1076_v30, %v1076_v30  ;;  %v1077_v35 = vsel %vm821_vm11, %v731_v26, %v949_v31 }
  0xd5   : > { %v1193_v39 = vpack.c.bf16 %v1077_v35, %v1076_v30  ;;  %v1425_v42 = vadd.f32 %v1424_v10, %v1077_v35  ;;  %v1501_v43 = vmul.f32 %v1077_v35, %v1077_v35  ;;  %v1078_v46 = vsel %vm822_vm12, %v467_v28, %v950_v34  ;;  %v2090_v10 = vld [vmem:[%s2382_s5 + $0x60] sm:$0xff] }
  0xd6   : > { %v644_v37 = vpop.f32.mrf.mxu2  ;;  %v1684_v38 = vadd.f32 %v1683_v5, %v1500_v33  ;;  %v1079_v47 = vsel %vm823_vm13, %v556_v29, %v951_v36  ;;  %v1315_v54 = vadd.f32 %v1314_v15, %v1078_v46  ;;  %v1502_v55 = vmul.f32 %v1078_v46, %v1078_v46 }
  0xd7   : > { %v733_v44 = vpop.f32.mrf.mxu3  ;;  %v468_v45 = vpop.f32.mrf.mxu0  ;;  %v645_v48 = vadd.f32 %v644_v37, %v2441_v49  ;;  %1257 = vst [vmem:[%s2446_s11 + $0x58] sm:$0xff] %v1193_v39  ;;  %v1721_v53 = vadd.f32 %v1720_v20, %v1501_v43  ;;  %v1194_v56 = vpack.c.bf16 %v1079_v47, %v1078_v46  ;;  %v1352_v57 = vadd.f32 %v1351_v22, %v1079_v47 }
  0xd8   : > { %v734_v50 = vadd.f32 %v733_v44, %v2444_v52  ;;  %v557_v51 = vpop.f32.mrf.mxu1  ;;  %v1503_v58 = vmul.f32 %v1079_v47, %v1079_v47  ;;  %v1611_v60 = vadd.f32 %v1610_v24, %v1502_v55  ;;  %v469_v62 = vadd.f32 %v468_v45, %v2427_v40 }
  0xd9   : > { %vm824_vm14 = vcmp.ge.f32.partialorder %v645_v48, 0.0  ;;  %v952_v59 = vmul.f32 0.1, %v645_v48  ;;  %1258 = vst [vmem:[%s2446_s11 + $0x60] sm:$0xff] %v1194_v56  ;;  %v558_v1 = vadd.f32 %v557_v51, %v2429_v41 }
  0xda   : > { %vm825_vm15 = vcmp.ge.f32.partialorder %v734_v50, 0.0  ;;  %v953_v61 = vmul.f32 0.1, %v734_v50  ;;  %v1648_v63 = vadd.f32 %v1647_v27, %v1503_v58  ;;  %vm826_vm0 = vcmp.ge.f32.partialorder %v469_v62, 0.0 }
  0xdb   : > { %v1080_v0 = vsel %vm824_vm14, %v645_v48, %v952_v59  ;;  %v954_v8 = vmul.f32 0.1, %v469_v62  ;;  %vm827_vm1 = vcmp.ge.f32.partialorder %v558_v1, 0.0  ;;  %v955_v12 = vmul.f32 0.1, %v558_v1 }
  0xdc   : > { %v1389_v2 = vadd.f32 %v1388_v32, %v1080_v0  ;;  %v1504_v3 = vmul.f32 %v1080_v0, %v1080_v0  ;;  %v1081_v4 = vsel %vm825_vm15, %v734_v50, %v953_v61 }
  0xdd   : > { %v1195_v5 = vpack.c.bf16 %v1081_v4, %v1080_v0  ;;  %v1426_v6 = vadd.f32 %v1425_v42, %v1081_v4  ;;  %v1505_v7 = vmul.f32 %v1081_v4, %v1081_v4  ;;  %v1082_v17 = vsel %vm826_vm0, %v469_v62, %v954_v8 }
  0xde   : > { %v646_v9 = vpop.f32.mrf.mxu2  ;;  %v1685_v11 = vadd.f32 %v1684_v38, %v1504_v3  ;;  %v1316_v21 = vadd.f32 %v1315_v54, %v1082_v17  ;;  %v1506_v22 = vmul.f32 %v1082_v17, %v1082_v17  ;;  %v1083_v23 = vsel %vm827_vm1, %v558_v1, %v955_v12  ;;  %v2091_v12 = vld [vmem:[%s2382_s5 + $0x68] sm:$0xff] }
  0xdf   : > { %v647_v13 = vadd.f32 %v646_v9, %v2441_v49  ;;  %v735_v14 = vpop.f32.mrf.mxu3  ;;  %v471_v15 = vpop.f32.mrf.mxu0  ;;  %1259 = vst [vmem:[%s2446_s11 + $0x68] sm:$0xff] %v1195_v5  ;;  %v1722_v16 = vadd.f32 %v1721_v53, %v1505_v7  ;;  %v1196_v24 = vpack.c.bf16 %v1083_v23, %v1082_v17  ;;  %v1353_v25 = vadd.f32 %v1352_v57, %v1083_v23 }
  0xe0   : > { %v736_v18 = vadd.f32 %v735_v14, %v2444_v52  ;;  %v472_v19 = vadd.f32 %v471_v15, %v2427_v40  ;;  %v560_v20 = vpop.f32.mrf.mxu1  ;;  %v1507_v26 = vmul.f32 %v1083_v23, %v1083_v23  ;;  %v1612_v28 = vadd.f32 %v1611_v60, %v1506_v22 }
  0xe1   : > { %vm828_vm3 = vcmp.ge.f32.partialorder %v647_v13, 0.0  ;;  %v956_v27 = vmul.f32 0.1, %v647_v13  ;;  %1260 = vst [vmem:[%s2446_s11 + $0x70] sm:$0xff] %v1196_v24  ;;  %v561_v33 = vadd.f32 %v560_v20, %v2429_v41 }
  0xe2   : > { %2016 = vmatmul.msk.bf16.gmra.mxu0 %vm377_vm2, %v2090_v10  ;;  %2032 = vmatmul.msk.bf16.gmra.mxu1 %vm377_vm2, %v2090_v10  ;;  %vm829_vm4 = vcmp.ge.f32.partialorder %v736_v18, 0.0  ;;  %v957_v29 = vmul.f32 0.1, %v736_v18  ;;  %vm830_vm5 = vcmp.ge.f32.partialorder %v472_v19, 0.0  ;;  %v1649_v30 = vadd.f32 %v1648_v63, %v1507_v26 }
  0xe3   : > { %2048 = vmatmul.msk.bf16.gmra.mxu2 %vm377_vm2, %v2090_v10  ;;  %v1084_v31 = vsel %vm828_vm3, %v647_v13, %v956_v27  ;;  %v958_v32 = vmul.f32 0.1, %v472_v19  ;;  %vm831_vm6 = vcmp.ge.f32.partialorder %v561_v33, 0.0  ;;  %v959_v51 = vmul.f32 0.1, %v561_v33 }
  0xe4   : > { %2064 = vmatmul.msk.bf16.gmra.mxu3 %vm377_vm2, %v2090_v10  ;;  %v1390_v34 = vadd.f32 %v1389_v2, %v1084_v31  ;;  %v1508_v35 = vmul.f32 %v1084_v31, %v1084_v31  ;;  %v1085_v36 = vsel %vm829_vm4, %v736_v18, %v957_v29 }
  0xe5   : > { %v1197_v37 = vpack.c.bf16 %v1085_v36, %v1084_v31  ;;  %v1427_v38 = vadd.f32 %v1426_v6, %v1085_v36  ;;  %v1509_v39 = vmul.f32 %v1085_v36, %v1085_v36  ;;  %v1086_v42 = vsel %vm830_vm5, %v472_v19, %v958_v32 }
  0xe6   : > { %v649_v43 = vpop.f32.mrf.mxu2  ;;  %v1686_v44 = vadd.f32 %v1685_v11, %v1508_v35  ;;  %v1317_v45 = vadd.f32 %v1316_v21, %v1086_v42  ;;  %v1510_v46 = vmul.f32 %v1086_v42, %v1086_v42  ;;  %v1087_v59 = vsel %vm831_vm6, %v561_v33, %v959_v51 }
  0xe7   : > { %v738_v47 = vpop.f32.mrf.mxu3  ;;  %v473_v48 = vpop.f32.mrf.mxu0  ;;  %1261 = vst [vmem:[%s2446_s11 + $0x78] sm:$0xff] %v1197_v37  ;;  %v1723_v50 = vadd.f32 %v1722_v16, %v1509_v39  ;;  %v650_v53 = vadd.f32 %v649_v43, %v2441_v49  ;;  %v1198_v61 = vpack.c.bf16 %v1087_v59, %v1086_v42  ;;  %v1354_v62 = vadd.f32 %v1353_v25, %v1087_v59 }
  0xe8   : > { %v739_v54 = vadd.f32 %v738_v47, %v2444_v52  ;;  %v562_v55 = vpop.f32.mrf.mxu1  ;;  %v1613_v56 = vadd.f32 %v1612_v28, %v1510_v46  ;;  %v474_v57 = vadd.f32 %v473_v48, %v2427_v40  ;;  %v1511_v63 = vmul.f32 %v1087_v59, %v1087_v59 }
  0xe9   : > { %v563_v58 = vadd.f32 %v562_v55, %v2429_v41  ;;  %vm832_vm7 = vcmp.ge.f32.partialorder %v650_v53, 0.0  ;;  %v960_v60 = vmul.f32 0.1, %v650_v53  ;;  %1262 = vst [vmem:[%s2446_s11 + $0x80] sm:$0xff] %v1198_v61 }
  0xea   : > { %vm833_vm8 = vcmp.ge.f32.partialorder %v739_v54, 0.0  ;;  %v961_v0 = vmul.f32 0.1, %v739_v54  ;;  %vm834_vm9 = vcmp.ge.f32.partialorder %v474_v57, 0.0  ;;  %v962_v2 = vmul.f32 0.1, %v474_v57 }
  0xeb   : > { %v1088_v1 = vsel %vm832_vm7, %v650_v53, %v960_v60  ;;  %vm835_vm10 = vcmp.ge.f32.partialorder %v563_v58, 0.0  ;;  %v1650_v3 = vadd.f32 %v1649_v30, %v1511_v63  ;;  %v963_v16 = vmul.f32 0.1, %v563_v58 }
  0xec   : > { %v1391_v4 = vadd.f32 %v1390_v34, %v1088_v1  ;;  %v1512_v5 = vmul.f32 %v1088_v1, %v1088_v1  ;;  %v1089_v6 = vsel %vm833_vm8, %v739_v54, %v961_v0  ;;  %v1090_v10 = vsel %vm834_vm9, %v474_v57, %v962_v2 }
  0xed   : > { %v1199_v7 = vpack.c.bf16 %v1089_v6, %v1088_v1  ;;  %v1428_v8 = vadd.f32 %v1427_v38, %v1089_v6  ;;  %v1513_v9 = vmul.f32 %v1089_v6, %v1089_v6  ;;  %v1318_v14 = vadd.f32 %v1317_v45, %v1090_v10 }
  0xee   : > { %v651_v11 = vpop.f32.mrf.mxu2  ;;  %v1687_v13 = vadd.f32 %v1686_v44, %v1512_v5  ;;  %v1514_v15 = vmul.f32 %v1090_v10, %v1090_v10  ;;  %v1091_v25 = vsel %vm835_vm10, %v563_v58, %v963_v16 }
  0xef   : > { %v740_v17 = vpop.f32.mrf.mxu3  ;;  %v476_v18 = vpop.f32.mrf.mxu0  ;;  %1263 = vst [vmem:[%s2446_s11 + $0x88] sm:$0xff] %v1199_v7  ;;  %v1724_v19 = vadd.f32 %v1723_v50, %v1513_v9  ;;  %v652_v20 = vadd.f32 %v651_v11, %v2441_v49  ;;  %v1200_v27 = vpack.c.bf16 %v1091_v25, %v1090_v10  ;;  %v1355_v28 = vadd.f32 %v1354_v62, %v1091_v25  ;;  %v2092_v10 = vld [vmem:[%s2382_s5 + $0x70] sm:$0xff] }
  0xf0   : > { %v741_v21 = vadd.f32 %v740_v17, %v2444_v52  ;;  %v477_v22 = vadd.f32 %v476_v18, %v2427_v40  ;;  %v565_v23 = vpop.f32.mrf.mxu1  ;;  %v1614_v24 = vadd.f32 %v1613_v56, %v1514_v15  ;;  %v1515_v29 = vmul.f32 %v1091_v25, %v1091_v25 }
  0xf1   : > { %v566_v26 = vadd.f32 %v565_v23, %v2429_v41  ;;  %vm836_vm11 = vcmp.ge.f32.partialorder %v652_v20, 0.0  ;;  %v964_v30 = vmul.f32 0.1, %v652_v20  ;;  %1264 = vst [vmem:[%s2446_s11 + $0x90] sm:$0xff] %v1200_v27 }
  0xf2   : > { %2017 = vmatmul.msk.bf16.gmra.mxu0 %vm377_vm2, %v2091_v12  ;;  %2033 = vmatmul.msk.bf16.gmra.mxu1 %vm377_vm2, %v2091_v12  ;;  %vm837_vm12 = vcmp.ge.f32.partialorder %v741_v21, 0.0  ;;  %v965_v31 = vmul.f32 0.1, %v741_v21  ;;  %vm838_vm13 = vcmp.ge.f32.partialorder %v477_v22, 0.0  ;;  %v1651_v32 = vadd.f32 %v1650_v3, %v1515_v29 }
  0xf3   : > { %2049 = vmatmul.msk.bf16.gmra.mxu2 %vm377_vm2, %v2091_v12  ;;  %v966_v33 = vmul.f32 0.1, %v477_v22  ;;  %vm839_vm14 = vcmp.ge.f32.partialorder %v566_v26, 0.0  ;;  %v967_v34 = vmul.f32 0.1, %v566_v26  ;;  %v1092_v35 = vsel %vm836_vm11, %v652_v20, %v964_v30 }
  0xf4   : > { %2065 = vmatmul.msk.bf16.gmra.mxu3 %vm377_vm2, %v2091_v12  ;;  %v1093_v36 = vsel %vm837_vm12, %v741_v21, %v965_v31  ;;  %v1392_v37 = vadd.f32 %v1391_v4, %v1092_v35  ;;  %v1516_v38 = vmul.f32 %v1092_v35, %v1092_v35 }
  0xf5   : > { %v1201_v39 = vpack.c.bf16 %v1093_v36, %v1092_v35  ;;  %v1429_v42 = vadd.f32 %v1428_v8, %v1093_v36  ;;  %v1517_v44 = vmul.f32 %v1093_v36, %v1093_v36  ;;  %v1094_v45 = vsel %vm838_vm13, %v477_v22, %v966_v33 }
  0xf6   : > { %v654_v43 = vpop.f32.mrf.mxu2  ;;  %v1095_v46 = vsel %vm839_vm14, %v566_v26, %v967_v34  ;;  %v1688_v51 = vadd.f32 %v1687_v13, %v1516_v38  ;;  %v1319_v53 = vadd.f32 %v1318_v14, %v1094_v45  ;;  %v1518_v54 = vmul.f32 %v1094_v45, %v1094_v45 }
  0xf7   : > { %v655_v47 = vadd.f32 %v654_v43, %v2441_v49  ;;  %v743_v48 = vpop.f32.mrf.mxu3  ;;  %v478_v50 = vpop.f32.mrf.mxu0  ;;  %1265 = vst [vmem:[%s2446_s11 + $0x98] sm:$0xff] %v1201_v39  ;;  %v1202_v55 = vpack.c.bf16 %v1095_v46, %v1094_v45  ;;  %v1725_v57 = vadd.f32 %v1724_v19, %v1517_v44  ;;  %v1356_v58 = vadd.f32 %v1355_v28, %v1095_v46 }
  0xf8   : > { %v567_v56 = vpop.f32.mrf.mxu1  ;;  %v1519_v59 = vmul.f32 %v1095_v46, %v1095_v46  ;;  %v1615_v60 = vadd.f32 %v1614_v24, %v1518_v54  ;;  %v744_v62 = vadd.f32 %v743_v48, %v2444_v52  ;;  %v479_v63 = vadd.f32 %v478_v50, %v2427_v40 }
  0xf9   : > { %vm840_vm15 = vcmp.ge.f32.partialorder %v655_v47, 0.0  ;;  %1266 = vst [vmem:[%s2446_s11 + $0xa0] sm:$0xff] %v1202_v55  ;;  %v968_v61 = vmul.f32 0.1, %v655_v47  ;;  %v568_v1 = vadd.f32 %v567_v56, %v2429_v41 }
  0xfa   : > { %v1652_v0 = vadd.f32 %v1651_v32, %v1519_v59  ;;  %vm841_vm0 = vcmp.ge.f32.partialorder %v744_v62, 0.0  ;;  %v969_v3 = vmul.f32 0.1, %v744_v62  ;;  %vm842_vm1 = vcmp.ge.f32.partialorder %v479_v63, 0.0 }
  0xfb   : > { %v1096_v2 = vsel %vm840_vm15, %v655_v47, %v968_v61  ;;  %v970_v6 = vmul.f32 0.1, %v479_v63  ;;  %vm843_vm3 = vcmp.ge.f32.partialorder %v568_v1, 0.0  ;;  %v971_v8 = vmul.f32 0.1, %v568_v1 }
  0xfc   : > { %v1393_v4 = vadd.f32 %v1392_v37, %v1096_v2  ;;  %v1520_v5 = vmul.f32 %v1096_v2, %v1096_v2  ;;  %v1097_v7 = vsel %vm841_vm0, %v744_v62, %v969_v3 }
  0xfd   : > { %v1203_v12 = vpack.c.bf16 %v1097_v7, %v1096_v2  ;;  %v1430_v13 = vadd.f32 %v1429_v42, %v1097_v7  ;;  %v1521_v14 = vmul.f32 %v1097_v7, %v1097_v7  ;;  %v1098_v17 = vsel %vm842_vm1, %v479_v63, %v970_v6 }
  0xfe   : > { %v656_v9 = vpop.f32.mrf.mxu2  ;;  %v1689_v11 = vadd.f32 %v1688_v51, %v1520_v5  ;;  %v1099_v18 = vsel %vm843_vm3, %v568_v1, %v971_v8  ;;  %v1320_v23 = vadd.f32 %v1319_v53, %v1098_v17  ;;  %v1522_v24 = vmul.f32 %v1098_v17, %v1098_v17 }
  0xff   : > { %v745_v15 = vpop.f32.mrf.mxu3  ;;  %v481_v16 = vpop.f32.mrf.mxu0  ;;  %v657_v19 = vadd.f32 %v656_v9, %v2441_v49  ;;  %1267 = vst [vmem:[%s2446_s11 + $0xa8] sm:$0xff] %v1203_v12  ;;  %v1726_v22 = vadd.f32 %v1725_v57, %v1521_v14  ;;  %v1204_v25 = vpack.c.bf16 %v1099_v18, %v1098_v17  ;;  %v1357_v26 = vadd.f32 %v1356_v58, %v1099_v18  ;;  %v2093_v14 = vld [vmem:[%s2382_s5 + $0x78] sm:$0xff]  ;;  %s2172_s5 = scalar_lea.hbm %s2777_s3, 1024 }
 0x100   : > { %v746_v20 = vadd.f32 %v745_v15, %v2444_v52  ;;  %v570_v21 = vpop.f32.mrf.mxu1  ;;  %v1523_v27 = vmul.f32 %v1099_v18, %v1099_v18  ;;  %v1616_v29 = vadd.f32 %v1615_v60, %v1522_v24  ;;  %v482_v31 = vadd.f32 %v481_v16, %v2427_v40  ;;  %p2174_p1 = scmp.lt.s32.totalorder %s2172_s5, %s2168_s28 }
 0x101   : > { %vm844_vm4 = vcmp.ge.f32.partialorder %v657_v19, 0.0  ;;  %v972_v28 = vmul.f32 0.1, %v657_v19  ;;  %1268 = vst [vmem:[%s2446_s11 + $0xb0] sm:$0xff] %v1204_v25  ;;  %v571_v34 = vadd.f32 %v570_v21, %v2429_v41 }
 0x102   : > { %2018 = vmatmul.msk.bf16.gmra.mxu0 %vm377_vm2, %v2092_v10  ;;  %2034 = vmatmul.msk.bf16.gmra.mxu1 %vm377_vm2, %v2092_v10  ;;  %vm845_vm5 = vcmp.ge.f32.partialorder %v746_v20, 0.0  ;;  %v973_v30 = vmul.f32 0.1, %v746_v20  ;;  %v1653_v32 = vadd.f32 %v1652_v0, %v1523_v27  ;;  %vm846_vm6 = vcmp.ge.f32.partialorder %v482_v31, 0.0  ;;  %p2175_p2 = por %p2174_p1, %p2173_p0 }
 0x103   : > { %2050 = vmatmul.msk.bf16.gmra.mxu2 %vm377_vm2, %v2092_v10  ;;  %v1100_v33 = vsel %vm844_vm4, %v657_v19, %v972_v28  ;;  %v974_v43 = vmul.f32 0.1, %v482_v31  ;;  %vm847_vm7 = vcmp.ge.f32.partialorder %v571_v34, 0.0  ;;  %v975_v46 = vmul.f32 0.1, %v571_v34 }
 0x104   : > { %2066 = vmatmul.msk.bf16.gmra.mxu3 %vm377_vm2, %v2092_v10  ;;  %v1394_v35 = vadd.f32 %v1393_v4, %v1100_v33  ;;  %v1524_v36 = vmul.f32 %v1100_v33, %v1100_v33  ;;  %v1101_v37 = vsel %vm845_vm5, %v746_v20, %v973_v30  ;;  %p2176_p3 = pnand %p2175_p2, %p2171_p13 }
 0x105   : > { %v1205_v38 = vpack.c.bf16 %v1101_v37, %v1100_v33  ;;  %v1431_v39 = vadd.f32 %v1430_v13, %v1101_v37  ;;  %v1525_v42 = vmul.f32 %v1101_v37, %v1101_v37  ;;  %v1102_v53 = vsel %vm846_vm6, %v482_v31, %v974_v43 }
 0x106   : > { %v659_v44 = vpop.f32.mrf.mxu2  ;;  %v1690_v45 = vadd.f32 %v1689_v11, %v1524_v36  ;;  %v1321_v57 = vadd.f32 %v1320_v23, %v1102_v53  ;;  %v1526_v58 = vmul.f32 %v1102_v53, %v1102_v53  ;;  %v1103_v59 = vsel %vm847_vm7, %v571_v34, %v975_v46 }
 0x107   : > { %v660_v47 = vadd.f32 %v659_v44, %v2441_v49  ;;  %v748_v48 = vpop.f32.mrf.mxu3  ;;  %v483_v50 = vpop.f32.mrf.mxu0  ;;  %1269 = vst [vmem:[%s2446_s11 + $0xb8] sm:$0xff] %v1205_v38  ;;  %v1727_v51 = vadd.f32 %v1726_v22, %v1525_v42  ;;  %v1206_v60 = vpack.c.bf16 %v1103_v59, %v1102_v53  ;;  %v1358_v61 = vadd.f32 %v1357_v26, %v1103_v59 }
 0x108   : > { %v749_v54 = vadd.f32 %v748_v48, %v2444_v52  ;;  %v484_v55 = vadd.f32 %v483_v50, %v2427_v40  ;;  %v572_v56 = vpop.f32.mrf.mxu1  ;;  %v1527_v62 = vmul.f32 %v1103_v59, %v1103_v59  ;;  %v1617_v0 = vadd.f32 %v1616_v29, %v1526_v58 }
 0x109   : > { %vm848_vm8 = vcmp.ge.f32.partialorder %v660_v47, 0.0  ;;  %v976_v63 = vmul.f32 0.1, %v660_v47  ;;  %1270 = vst [vmem:[%s2446_s11 + $0xc0] sm:$0xff] %v1206_v60  ;;  %v573_v5 = vadd.f32 %v572_v56, %v2429_v41 }
 0x10a   : > { %vm849_vm9 = vcmp.ge.f32.partialorder %v749_v54, 0.0  ;;  %v977_v1 = vmul.f32 0.1, %v749_v54  ;;  %vm850_vm10 = vcmp.ge.f32.partialorder %v484_v55, 0.0  ;;  %v1654_v2 = vadd.f32 %v1653_v32, %v1527_v62 }
 0x10b   : > { %v1104_v3 = vsel %vm848_vm8, %v660_v47, %v976_v63  ;;  %v978_v4 = vmul.f32 0.1, %v484_v55  ;;  %vm851_vm11 = vcmp.ge.f32.partialorder %v573_v5, 0.0  ;;  %v979_v21 = vmul.f32 0.1, %v573_v5 }
 0x10c   : > { %v1395_v6 = vadd.f32 %v1394_v35, %v1104_v3  ;;  %v1528_v7 = vmul.f32 %v1104_v3, %v1104_v3  ;;  %v1105_v8 = vsel %vm849_vm9, %v749_v54, %v977_v1 }
 0x10d   : > { %v1207_v9 = vpack.c.bf16 %v1105_v8, %v1104_v3  ;;  %v1432_v10 = vadd.f32 %v1431_v39, %v1105_v8  ;;  %v1529_v11 = vmul.f32 %v1105_v8, %v1105_v8  ;;  %v1106_v12 = vsel %vm850_vm10, %v484_v55, %v978_v4 }
 0x10e   : > { %v661_v13 = vpop.f32.mrf.mxu2  ;;  %v1691_v15 = vadd.f32 %v1690_v45, %v1528_v7  ;;  %v1322_v16 = vadd.f32 %v1321_v57, %v1106_v12  ;;  %v1530_v17 = vmul.f32 %v1106_v12, %v1106_v12  ;;  %v1107_v28 = vsel %vm851_vm11, %v573_v5, %v979_v21 }
 0x10f   : > { %v750_v18 = vpop.f32.mrf.mxu3  ;;  %v486_v19 = vpop.f32.mrf.mxu0  ;;  %1271 = vst [vmem:[%s2446_s11 + $0xc8] sm:$0xff] %v1207_v9  ;;  %v1728_v20 = vadd.f32 %v1727_v51, %v1529_v11  ;;  %v662_v22 = vadd.f32 %v661_v13, %v2441_v49  ;;  %v1208_v30 = vpack.c.bf16 %v1107_v28, %v1106_v12  ;;  %v1359_v31 = vadd.f32 %v1358_v61, %v1107_v28 }
 0x110   : > { %v751_v23 = vadd.f32 %v750_v18, %v2444_v52  ;;  %v575_v24 = vpop.f32.mrf.mxu1  ;;  %v1618_v25 = vadd.f32 %v1617_v0, %v1530_v17  ;;  %v487_v26 = vadd.f32 %v486_v19, %v2427_v40  ;;  %v1531_v32 = vmul.f32 %v1107_v28, %v1107_v28 }
 0x111   : > { %v576_v27 = vadd.f32 %v575_v24, %v2429_v41  ;;  %vm852_vm12 = vcmp.ge.f32.partialorder %v662_v22, 0.0  ;;  %v980_v29 = vmul.f32 0.1, %v662_v22  ;;  %1272 = vst [vmem:[%s2446_s11 + $0xd0] sm:$0xff] %v1208_v30 }
 0x112   : > { %vm853_vm13 = vcmp.ge.f32.partialorder %v751_v23, 0.0  ;;  %2019 = vmatmul.msk.bf16.gmra.mxu0 %vm377_vm2, %v2093_v14  ;;  %2035 = vmatmul.msk.bf16.gmra.mxu1 %vm377_vm2, %v2093_v14  ;;  %v981_v33 = vmul.f32 0.1, %v751_v23  ;;  %vm854_vm14 = vcmp.ge.f32.partialorder %v487_v26, 0.0  ;;  %v982_v35 = vmul.f32 0.1, %v487_v26 }
 0x113   : > { %2051 = vmatmul.msk.bf16.gmra.mxu2 %vm377_vm2, %v2093_v14  ;;  %v1108_v34 = vsel %vm852_vm12, %v662_v22, %v980_v29  ;;  %vm855_vm15 = vcmp.ge.f32.partialorder %v576_v27, 0.0  ;;  %v1655_v36 = vadd.f32 %v1654_v2, %v1531_v32  ;;  %v983_v51 = vmul.f32 0.1, %v576_v27 }
 0x114   : > { %2067 = vmatmul.msk.bf16.gmra.mxu3 %vm377_vm2, %v2093_v14  ;;  %v1396_v37 = vadd.f32 %v1395_v6, %v1108_v34  ;;  %v1532_v38 = vmul.f32 %v1108_v34, %v1108_v34  ;;  %v1109_v39 = vsel %vm853_vm13, %v751_v23, %v981_v33  ;;  %v1110_v45 = vsel %vm854_vm14, %v487_v26, %v982_v35 }
 0x115   : > { %v1209_v42 = vpack.c.bf16 %v1109_v39, %v1108_v34  ;;  %v1433_v43 = vadd.f32 %v1432_v10, %v1109_v39  ;;  %v1533_v44 = vmul.f32 %v1109_v39, %v1109_v39  ;;  %v1323_v48 = vadd.f32 %v1322_v16, %v1110_v45 }
 0x116   : > { %v664_v46 = vpop.f32.mrf.mxu2  ;;  %v1692_v47 = vadd.f32 %v1691_v15, %v1532_v38  ;;  %v1534_v50 = vmul.f32 %v1110_v45, %v1110_v45  ;;  %v1111_v61 = vsel %vm855_vm15, %v576_v27, %v983_v51 }
 0x117   : > { %v753_v53 = vpop.f32.mrf.mxu3  ;;  %v488_v54 = vpop.f32.mrf.mxu0  ;;  %1273 = vst [vmem:[%s2446_s11 + $0xd8] sm:$0xff] %v1209_v42  ;;  %v1729_v55 = vadd.f32 %v1728_v20, %v1533_v44  ;;  %v665_v56 = vadd.f32 %v664_v46, %v2441_v49  ;;  %v1210_v63 = vpack.c.bf16 %v1111_v61, %v1110_v45  ;;  %v1360_v0 = vadd.f32 %v1359_v31, %v1111_v61 }
 0x118   : > { %v754_v57 = vadd.f32 %v753_v53, %v2444_v52  ;;  %v489_v58 = vadd.f32 %v488_v54, %v2427_v40  ;;  %v577_v59 = vpop.f32.mrf.mxu1  ;;  %v1619_v60 = vadd.f32 %v1618_v25, %v1534_v50  ;;  %v1535_v1 = vmul.f32 %v1111_v61, %v1111_v61 }
 0x119   : > { %v578_v62 = vadd.f32 %v577_v59, %v2429_v41  ;;  %vm856_vm2 = vcmp.ge.f32.partialorder %v665_v56, 0.0  ;;  %v984_v2 = vmul.f32 0.1, %v665_v56  ;;  %1274 = vst [vmem:[%s2446_s11 + $0xe0] sm:$0xff] %v1210_v63 }
 0x11a   : > { %vm857_vm0 = vcmp.ge.f32.partialorder %v754_v57, 0.0  ;;  %v985_v3 = vmul.f32 0.1, %v754_v57  ;;  %vm858_vm1 = vcmp.ge.f32.partialorder %v489_v58, 0.0  ;;  %v1656_v4 = vadd.f32 %v1655_v36, %v1535_v1 }
 0x11b   : > { %v986_v5 = vmul.f32 0.1, %v489_v58  ;;  %vm859_vm3 = vcmp.ge.f32.partialorder %v578_v62, 0.0  ;;  %v987_v6 = vmul.f32 0.1, %v578_v62  ;;  %v1112_v7 = vsel %vm856_vm2, %v665_v56, %v984_v2 }
 0x11c   : > { %v1113_v8 = vsel %vm857_vm0, %v754_v57, %v985_v3  ;;  %v1397_v9 = vadd.f32 %v1396_v37, %v1112_v7  ;;  %v1536_v10 = vmul.f32 %v1112_v7, %v1112_v7 }
 0x11d   : > { %v1211_v11 = vpack.c.bf16 %v1113_v8, %v1112_v7  ;;  %v1434_v12 = vadd.f32 %v1433_v43, %v1113_v8  ;;  %v1537_v14 = vmul.f32 %v1113_v8, %v1113_v8  ;;  %v1114_v15 = vsel %vm858_vm1, %v489_v58, %v986_v5 }
 0x11e   : > { %v666_v13 = vpop.f32.mrf.mxu2  ;;  %v1115_v16 = vsel %vm859_vm3, %v578_v62, %v987_v6  ;;  %v1693_v20 = vadd.f32 %v1692_v47, %v1536_v10  ;;  %v1324_v21 = vadd.f32 %v1323_v48, %v1114_v15  ;;  %v1538_v22 = vmul.f32 %v1114_v15, %v1114_v15 }
 0x11f   : > { %v667_v17 = vadd.f32 %v666_v13, %v2441_v49  ;;  %v755_v18 = vpop.f32.mrf.mxu3  ;;  %v491_v19 = vpop.f32.mrf.mxu0  ;;  %1275 = vst [vmem:[%s2446_s11 + $0xe8] sm:$0xff] %v1211_v11  ;;  %v1212_v23 = vpack.c.bf16 %v1115_v16, %v1114_v15  ;;  %v1730_v25 = vadd.f32 %v1729_v55, %v1537_v14  ;;  %v1361_v26 = vadd.f32 %v1360_v0, %v1115_v16 }
 0x120   : > { %v580_v24 = vpop.f32.mrf.mxu1  ;;  %v1539_v27 = vmul.f32 %v1115_v16, %v1115_v16  ;;  %v1620_v28 = vadd.f32 %v1619_v60, %v1538_v22  ;;  %v756_v30 = vadd.f32 %v755_v18, %v2444_v52  ;;  %v492_v31 = vadd.f32 %v491_v19, %v2427_v40 }
 0x121   : > { %vm860_vm4 = vcmp.ge.f32.partialorder %v667_v17, 0.0  ;;  %1276 = vst [vmem:[%s2446_s11 + $0xf0] sm:$0xff] %v1212_v23  ;;  %v988_v29 = vmul.f32 0.1, %v667_v17  ;;  %v581_v33 = vadd.f32 %v580_v24, %v2429_v41 }
 0x122   : > { %v1657_v32 = vadd.f32 %v1656_v4, %v1539_v27  ;;  %vm861_vm5 = vcmp.ge.f32.partialorder %v756_v30, 0.0  ;;  %v989_v35 = vmul.f32 0.1, %v756_v30  ;;  %vm862_vm6 = vcmp.ge.f32.partialorder %v492_v31, 0.0 }
 0x123   : > { %v1116_v34 = vsel %vm860_vm4, %v667_v17, %v988_v29  ;;  %v990_v38 = vmul.f32 0.1, %v492_v31  ;;  %vm863_vm7 = vcmp.ge.f32.partialorder %v581_v33, 0.0  ;;  %v991_v42 = vmul.f32 0.1, %v581_v33 }
 0x124   : > { %v1398_v36 = vadd.f32 %v1397_v9, %v1116_v34  ;;  %v1540_v37 = vmul.f32 %v1116_v34, %v1116_v34  ;;  %v1117_v39 = vsel %vm861_vm5, %v756_v30, %v989_v35 }
 0x125   : > { %v1213_v45 = vpack.c.bf16 %v1117_v39, %v1116_v34  ;;  %v1435_v46 = vadd.f32 %v1434_v12, %v1117_v39  ;;  %v1541_v47 = vmul.f32 %v1117_v39, %v1117_v39  ;;  %v1118_v51 = vsel %vm862_vm6, %v492_v31, %v990_v38 }
 0x126   : > { %v669_v43 = vpop.f32.mrf.mxu2  ;;  %v1694_v44 = vadd.f32 %v1693_v20, %v1540_v37  ;;  %v1119_v53 = vsel %vm863_vm7, %v581_v33, %v991_v42  ;;  %v1325_v58 = vadd.f32 %v1324_v21, %v1118_v51  ;;  %v1542_v59 = vmul.f32 %v1118_v51, %v1118_v51 }
 0x127   : > { %v758_v48 = vpop.f32.mrf.mxu3  ;;  %v493_v50 = vpop.f32.mrf.mxu0  ;;  %v670_v54 = vadd.f32 %v669_v43, %v2441_v49  ;;  %1277 = vst [vmem:[%s2446_s11 + $0xf8] sm:$0xff] %v1213_v45  ;;  %v1731_v57 = vadd.f32 %v1730_v25, %v1541_v47  ;;  %v1214_v60 = vpack.c.bf16 %v1119_v53, %v1118_v51  ;;  %v1362_v61 = vadd.f32 %v1361_v26, %v1119_v53 }
 0x128   : > { %v759_v55 = vadd.f32 %v758_v48, %v2444_v52  ;;  %v582_v56 = vpop.f32.mrf.mxu1  ;;  %v1543_v62 = vmul.f32 %v1119_v53, %v1119_v53  ;;  %v1621_v0 = vadd.f32 %v1620_v28, %v1542_v59  ;;  %v494_v2 = vadd.f32 %v493_v50, %v2427_v40 }
 0x129   : > { %vm864_vm8 = vcmp.ge.f32.partialorder %v670_v54, 0.0  ;;  %v992_v63 = vmul.f32 0.1, %v670_v54  ;;  %1278 = vst [vmem:[%s2446_s11 + $0x100] sm:$0xff] %v1214_v60  ;;  %v583_v5 = vadd.f32 %v582_v56, %v2429_v41 }
 0x12a   : > { %vm865_vm9 = vcmp.ge.f32.partialorder %v759_v55, 0.0  ;;  %v993_v1 = vmul.f32 0.1, %v759_v55  ;;  %v1658_v3 = vadd.f32 %v1657_v32, %v1543_v62  ;;  %vm866_vm10 = vcmp.ge.f32.partialorder %v494_v2, 0.0 }
 0x12b   : > { %v1120_v4 = vsel %vm864_vm8, %v670_v54, %v992_v63  ;;  %v994_v12 = vmul.f32 0.1, %v494_v2  ;;  %vm867_vm11 = vcmp.ge.f32.partialorder %v583_v5, 0.0  ;;  %v995_v15 = vmul.f32 0.1, %v583_v5 }
 0x12c   : > { %v1399_v6 = vadd.f32 %v1398_v36, %v1120_v4  ;;  %v1544_v7 = vmul.f32 %v1120_v4, %v1120_v4  ;;  %v1121_v8 = vsel %vm865_vm9, %v759_v55, %v993_v1 }
 0x12d   : > { %v1215_v9 = vpack.c.bf16 %v1121_v8, %v1120_v4  ;;  %v1436_v10 = vadd.f32 %v1435_v46, %v1121_v8  ;;  %v1545_v11 = vmul.f32 %v1121_v8, %v1121_v8  ;;  %v1122_v20 = vsel %vm866_vm10, %v494_v2, %v994_v12 }
 0x12e   : > { %v671_v13 = vpop.f32.mrf.mxu2  ;;  %v1695_v14 = vadd.f32 %v1694_v44, %v1544_v7  ;;  %v1326_v24 = vadd.f32 %v1325_v58, %v1122_v20  ;;  %v1546_v25 = vmul.f32 %v1122_v20, %v1122_v20  ;;  %v1123_v26 = vsel %vm867_vm11, %v583_v5, %v995_v15 }
 0x12f   : > { %v672_v16 = vadd.f32 %v671_v13, %v2441_v49  ;;  %v760_v17 = vpop.f32.mrf.mxu3  ;;  %v496_v18 = vpop.f32.mrf.mxu0  ;;  %1279 = vst [vmem:[%s2446_s11 + $0x108] sm:$0xff] %v1215_v9  ;;  %v1732_v19 = vadd.f32 %v1731_v57, %v1545_v11  ;;  %v1216_v27 = vpack.c.bf16 %v1123_v26, %v1122_v20  ;;  %v1363_v28 = vadd.f32 %v1362_v61, %v1123_v26 }
 0x130   : > { %v761_v21 = vadd.f32 %v760_v17, %v2444_v52  ;;  %v497_v22 = vadd.f32 %v496_v18, %v2427_v40  ;;  %v585_v23 = vpop.f32.mrf.mxu1  ;;  %v1547_v29 = vmul.f32 %v1123_v26, %v1123_v26  ;;  %v1622_v31 = vadd.f32 %v1621_v0, %v1546_v25 }
 0x131   : > { %vm868_vm12 = vcmp.ge.f32.partialorder %v672_v16, 0.0  ;;  %v996_v30 = vmul.f32 0.1, %v672_v16  ;;  %1280 = vst [vmem:[%s2446_s11 + $0x110] sm:$0xff] %v1216_v27  ;;  %v586_v36 = vadd.f32 %v585_v23, %v2429_v41 }
 0x132   : > { %vm869_vm13 = vcmp.ge.f32.partialorder %v761_v21, 0.0  ;;  %v997_v32 = vmul.f32 0.1, %v761_v21  ;;  %vm870_vm14 = vcmp.ge.f32.partialorder %v497_v22, 0.0  ;;  %v1659_v33 = vadd.f32 %v1658_v3, %v1547_v29 }
 0x133   : > { %v1124_v34 = vsel %vm868_vm12, %v672_v16, %v996_v30  ;;  %v998_v35 = vmul.f32 0.1, %v497_v22  ;;  %vm871_vm15 = vcmp.ge.f32.partialorder %v586_v36, 0.0  ;;  %v999_v55 = vmul.f32 0.1, %v586_v36 }
 0x134   : > { %v1400_v37 = vadd.f32 %v1399_v6, %v1124_v34  ;;  %v1548_v38 = vmul.f32 %v1124_v34, %v1124_v34  ;;  %v1125_v39 = vsel %vm869_vm13, %v761_v21, %v997_v32 }
 0x135   : > { %v1217_v42 = vpack.c.bf16 %v1125_v39, %v1124_v34  ;;  %v1437_v43 = vadd.f32 %v1436_v10, %v1125_v39  ;;  %v1549_v44 = vmul.f32 %v1125_v39, %v1125_v39  ;;  %v1126_v45 = vsel %vm870_vm14, %v497_v22, %v998_v35 }
 0x136   : > { %v674_v46 = vpop.f32.mrf.mxu2  ;;  %v1696_v47 = vadd.f32 %v1695_v14, %v1548_v38  ;;  %v1327_v48 = vadd.f32 %v1326_v24, %v1126_v45  ;;  %v1550_v50 = vmul.f32 %v1126_v45, %v1126_v45  ;;  %v1127_v62 = vsel %vm871_vm15, %v586_v36, %v999_v55 }
 0x137   : > { %v763_v51 = vpop.f32.mrf.mxu3  ;;  %v498_v53 = vpop.f32.mrf.mxu0  ;;  %1281 = vst [vmem:[%s2446_s11 + $0x118] sm:$0xff] %v1217_v42  ;;  %v1733_v54 = vadd.f32 %v1732_v19, %v1549_v44  ;;  %v675_v56 = vadd.f32 %v674_v46, %v2441_v49  ;;  %v1218_v0 = vpack.c.bf16 %v1127_v62, %v1126_v45  ;;  %v1364_v1 = vadd.f32 %v1363_v28, %v1127_v62 }
 0x138   : > { %v764_v57 = vadd.f32 %v763_v51, %v2444_v52  ;;  %v587_v58 = vpop.f32.mrf.mxu1  ;;  %v1623_v59 = vadd.f32 %v1622_v31, %v1550_v50  ;;  %v499_v60 = vadd.f32 %v498_v53, %v2427_v40  ;;  %v1551_v2 = vmul.f32 %v1127_v62, %v1127_v62 }
 0x139   : > { %v588_v61 = vadd.f32 %v587_v58, %v2429_v41  ;;  %vm872_vm2 = vcmp.ge.f32.partialorder %v675_v56, 0.0  ;;  %v1000_v63 = vmul.f32 0.1, %v675_v56  ;;  %1282 = vst [vmem:[%s2446_s11 + $0x120] sm:$0xff] %v1218_v0 }
 0x13a   : > { %vm873_vm0 = vcmp.ge.f32.partialorder %v764_v57, 0.0  ;;  %v1001_v3 = vmul.f32 0.1, %v764_v57  ;;  %vm874_vm1 = vcmp.ge.f32.partialorder %v499_v60, 0.0  ;;  %v1002_v5 = vmul.f32 0.1, %v499_v60 }
 0x13b   : > { %v1128_v4 = vsel %vm872_vm2, %v675_v56, %v1000_v63  ;;  %vm875_vm3 = vcmp.ge.f32.partialorder %v588_v61, 0.0  ;;  %v1660_v6 = vadd.f32 %v1659_v33, %v1551_v2  ;;  %v1003_v18 = vmul.f32 0.1, %v588_v61 }
 0x13c   : > { %v1401_v7 = vadd.f32 %v1400_v37, %v1128_v4  ;;  %v1552_v8 = vmul.f32 %v1128_v4, %v1128_v4  ;;  %v1129_v9 = vsel %vm873_vm0, %v764_v57, %v1001_v3  ;;  %v1130_v13 = vsel %vm874_vm1, %v499_v60, %v1002_v5 }
 0x13d   : > { %v1219_v10 = vpack.c.bf16 %v1129_v9, %v1128_v4  ;;  %v1438_v11 = vadd.f32 %v1437_v43, %v1129_v9  ;;  %v1553_v12 = vmul.f32 %v1129_v9, %v1129_v9  ;;  %v1328_v16 = vadd.f32 %v1327_v48, %v1130_v13 }
 0x13e   : > { %v676_v14 = vpop.f32.mrf.mxu2  ;;  %v1697_v15 = vadd.f32 %v1696_v47, %v1552_v8  ;;  %v1554_v17 = vmul.f32 %v1130_v13, %v1130_v13  ;;  %v1131_v27 = vsel %vm875_vm3, %v588_v61, %v1003_v18 }
 0x13f   : > { %v765_v19 = vpop.f32.mrf.mxu3  ;;  %v501_v20 = vpop.f32.mrf.mxu0  ;;  %1283 = vst [vmem:[%s2446_s11 + $0x128] sm:$0xff] %v1219_v10  ;;  %v1734_v21 = vadd.f32 %v1733_v54, %v1553_v12  ;;  %v677_v22 = vadd.f32 %v676_v14, %v2441_v49  ;;  %v1220_v29 = vpack.c.bf16 %v1131_v27, %v1130_v13  ;;  %v1365_v30 = vadd.f32 %v1364_v1, %v1131_v27 }
 0x140   : > { %v766_v23 = vadd.f32 %v765_v19, %v2444_v52  ;;  %v502_v24 = vadd.f32 %v501_v20, %v2427_v40  ;;  %v590_v25 = vpop.f32.mrf.mxu1  ;;  %v1624_v26 = vadd.f32 %v1623_v59, %v1554_v17  ;;  %v1555_v31 = vmul.f32 %v1131_v27, %v1131_v27 }
 0x141   : > { %v591_v28 = vadd.f32 %v590_v25, %v2429_v41  ;;  %vm876_vm4 = vcmp.ge.f32.partialorder %v677_v22, 0.0  ;;  %v1004_v32 = vmul.f32 0.1, %v677_v22  ;;  %1284 = vst [vmem:[%s2446_s11 + $0x130] sm:$0xff] %v1220_v29 }
 0x142   : > { %vm877_vm5 = vcmp.ge.f32.partialorder %v766_v23, 0.0  ;;  %v1005_v33 = vmul.f32 0.1, %v766_v23  ;;  %vm878_vm6 = vcmp.ge.f32.partialorder %v502_v24, 0.0  ;;  %v1661_v34 = vadd.f32 %v1660_v6, %v1555_v31 }
 0x143   : > { %v1006_v35 = vmul.f32 0.1, %v502_v24  ;;  %vm879_vm7 = vcmp.ge.f32.partialorder %v591_v28, 0.0  ;;  %v1007_v36 = vmul.f32 0.1, %v591_v28  ;;  %v1132_v37 = vsel %vm876_vm4, %v677_v22, %v1004_v32 }
 0x144   : > { %v1133_v38 = vsel %vm877_vm5, %v766_v23, %v1005_v33  ;;  %v1402_v39 = vadd.f32 %v1401_v7, %v1132_v37  ;;  %v1556_v42 = vmul.f32 %v1132_v37, %v1132_v37 }
 0x145   : > { %v1221_v43 = vpack.c.bf16 %v1133_v38, %v1132_v37  ;;  %v1439_v44 = vadd.f32 %v1438_v11, %v1133_v38  ;;  %v1557_v46 = vmul.f32 %v1133_v38, %v1133_v38  ;;  %v1134_v47 = vsel %vm878_vm6, %v502_v24, %v1006_v35 }
 0x146   : > { %v679_v45 = vpop.f32.mrf.mxu2  ;;  %v1135_v48 = vsel %vm879_vm7, %v591_v28, %v1007_v36  ;;  %v1698_v54 = vadd.f32 %v1697_v15, %v1556_v42  ;;  %v1329_v55 = vadd.f32 %v1328_v16, %v1134_v47  ;;  %v1558_v56 = vmul.f32 %v1134_v47, %v1134_v47 }
 0x147   : > { %v680_v50 = vadd.f32 %v679_v45, %v2441_v49  ;;  %v768_v51 = vpop.f32.mrf.mxu3  ;;  %v503_v53 = vpop.f32.mrf.mxu0  ;;  %1285 = vst [vmem:[%s2446_s11 + $0x138] sm:$0xff] %v1221_v43  ;;  %v1222_v57 = vpack.c.bf16 %v1135_v48, %v1134_v47  ;;  %v1735_v59 = vadd.f32 %v1734_v21, %v1557_v46  ;;  %v1366_v60 = vadd.f32 %v1365_v30, %v1135_v48 }
 0x148   : > { %v592_v58 = vpop.f32.mrf.mxu1  ;;  %v1559_v61 = vmul.f32 %v1135_v48, %v1135_v48  ;;  %v1625_v62 = vadd.f32 %v1624_v26, %v1558_v56  ;;  %v769_v0 = vadd.f32 %v768_v51, %v2444_v52  ;;  %v504_v1 = vadd.f32 %v503_v53, %v2427_v40 }
 0x149   : > { %vm880_vm8 = vcmp.ge.f32.partialorder %v680_v50, 0.0  ;;  %1286 = vst [vmem:[%s2446_s11 + $0x140] sm:$0xff] %v1222_v57  ;;  %v1008_v63 = vmul.f32 0.1, %v680_v50  ;;  %v593_v3 = vadd.f32 %v592_v58, %v2429_v41 }
 0x14a   : > { %v1662_v2 = vadd.f32 %v1661_v34, %v1559_v61  ;;  %vm881_vm9 = vcmp.ge.f32.partialorder %v769_v0, 0.0  ;;  %v1009_v5 = vmul.f32 0.1, %v769_v0  ;;  %vm882_vm10 = vcmp.ge.f32.partialorder %v504_v1, 0.0 }
 0x14b   : > { %v1136_v4 = vsel %vm880_vm8, %v680_v50, %v1008_v63  ;;  %v1010_v8 = vmul.f32 0.1, %v504_v1  ;;  %vm883_vm11 = vcmp.ge.f32.partialorder %v593_v3, 0.0  ;;  %v1011_v10 = vmul.f32 0.1, %v593_v3 }
 0x14c   : > { %v2613_v6 = vadd.f32 %v1402_v39, %v1136_v4  ;;  %v1560_v7 = vmul.f32 %v1136_v4, %v1136_v4  ;;  %v1137_v9 = vsel %vm881_vm9, %v769_v0, %v1009_v5 }
 0x14d   : > { %v1223_v13 = vpack.c.bf16 %v1137_v9, %v1136_v4  ;;  %v2615_v14 = vadd.f32 %v1439_v44, %v1137_v9  ;;  %v1561_v15 = vmul.f32 %v1137_v9, %v1137_v9  ;;  %v1138_v18 = vsel %vm882_vm10, %v504_v1, %v1010_v8 }
 0x14e   : > { %v681_v11 = vpop.f32.mrf.mxu2  ;;  %v1699_v12 = vadd.f32 %v1698_v54, %v1560_v7  ;;  %v1139_v19 = vsel %vm883_vm11, %v593_v3, %v1011_v10  ;;  %v2620_v24 = vadd.f32 %v1329_v55, %v1138_v18  ;;  %v1562_v25 = vmul.f32 %v1138_v18, %v1138_v18 }
 0x14f   : > { %v770_v16 = vpop.f32.mrf.mxu3  ;;  %v506_v17 = vpop.f32.mrf.mxu0  ;;  %v682_v20 = vadd.f32 %v681_v11, %v2441_v49  ;;  %1287 = vst [vmem:[%s2446_s11 + $0x148] sm:$0xff] %v1223_v13  ;;  %v1736_v23 = vadd.f32 %v1735_v59, %v1561_v15  ;;  %v1224_v26 = vpack.c.bf16 %v1139_v19, %v1138_v18  ;;  %v2622_v27 = vadd.f32 %v1366_v60, %v1139_v19 }
 0x150   : > { %v771_v21 = vadd.f32 %v770_v16, %v2444_v52  ;;  %v595_v22 = vpop.f32.mrf.mxu1  ;;  %v1563_v28 = vmul.f32 %v1139_v19, %v1139_v19  ;;  %v1626_v30 = vadd.f32 %v1625_v62, %v1562_v25  ;;  %v507_v32 = vadd.f32 %v506_v17, %v2427_v40 }
 0x151   : > { %vm884_vm12 = vcmp.ge.f32.partialorder %v682_v20, 0.0  ;;  %v1012_v29 = vmul.f32 0.1, %v682_v20  ;;  %1288 = vst [vmem:[%s2446_s11 + $0x150] sm:$0xff] %v1224_v26  ;;  %v596_v35 = vadd.f32 %v595_v22, %v2429_v41 }
 0x152   : > { %vm885_vm13 = vcmp.ge.f32.partialorder %v771_v21, 0.0  ;;  %v1013_v31 = vmul.f32 0.1, %v771_v21  ;;  %v2626_v33 = vadd.f32 %v1662_v2, %v1563_v28  ;;  %vm886_vm14 = vcmp.ge.f32.partialorder %v507_v32, 0.0 }
 0x153   : > { %v1140_v34 = vsel %vm884_vm12, %v682_v20, %v1012_v29  ;;  %v1014_v42 = vmul.f32 0.1, %v507_v32  ;;  %vm887_vm15 = vcmp.ge.f32.partialorder %v596_v35, 0.0  ;;  %v1015_v45 = vmul.f32 0.1, %v596_v35 }
 0x154   : > { %v1564_v36 = vmul.f32 %v1140_v34, %v1140_v34  ;;  %v1141_v37 = vsel %vm885_vm13, %v771_v21, %v1013_v31  ;;  %v1404_v21 = vadd.f32 %v2613_v6, %v1140_v34 }
 0x155   : > { %v1225_v38 = vpack.c.bf16 %v1141_v37, %v1140_v34  ;;  %v1565_v39 = vmul.f32 %v1141_v37, %v1141_v37  ;;  %v1142_v51 = vsel %vm886_vm14, %v507_v32, %v1014_v42  ;;  %v1143_v57 = vsel %vm887_vm15, %v596_v35, %v1015_v45 }
 0x156   : > { %v684_v43 = vpop.f32.mrf.mxu2  ;;  %v2629_v44 = vadd.f32 %v1699_v12, %v1564_v36  ;;  %v1566_v56 = vmul.f32 %v1142_v51, %v1142_v51  ;;  %v1226_v58 = vpack.c.bf16 %v1143_v57, %v1142_v51  ;;  %v1567_v17 = vmul.f32 %v1143_v57, %v1143_v57 }
 0x157   : > { %v685_v46 = vadd.f32 %v684_v43, %v2441_v49  ;;  %v773_v47 = vpop.f32.mrf.mxu3  ;;  %v508_v48 = vpop.f32.mrf.mxu0  ;;  %1289 = vst [vmem:[%s2446_s11 + $0x158] sm:$0xff] %v1225_v38  ;;  %v2633_v50 = vadd.f32 %v1736_v23, %v1565_v39  ;;  %v1441_v22 = vadd.f32 %v2615_v14, %v1141_v37  ;;  %v1331_v26 = vadd.f32 %v2620_v24, %v1142_v51 }
 0x158   : > { %v774_v53 = vadd.f32 %v773_v47, %v2444_v52  ;;  %v509_v54 = vadd.f32 %v508_v48, %v2427_v40  ;;  %v597_v55 = vpop.f32.mrf.mxu1  ;;  %v2637_v60 = vadd.f32 %v1626_v30, %v1566_v56  ;;  %1290 = vst [vmem:[%s2446_s11 + $0x160] sm:$0xff] %v1226_v58  ;;  %v1368_v30 = vadd.f32 %v2622_v27, %v1143_v57 }
 0x159   : > { %vm888_vm2 = vcmp.ge.f32.partialorder %v685_v46, 0.0  ;;  %v1016_v59 = vmul.f32 0.1, %v685_v46  ;;  %v598_v0 = vadd.f32 %v597_v55, %v2429_v41  ;;  %v1664_v31 = vadd.f32 %v2626_v33, %v1567_v17 }
 0x15a   : > { %vm889_vm0 = vcmp.ge.f32.partialorder %v774_v53, 0.0  ;;  %v1017_v61 = vmul.f32 0.1, %v774_v53  ;;  %v1018_v63 = vmul.f32 0.1, %v509_v54  ;;  %vm890_vm1 = vcmp.ge.f32.partialorder %v509_v54, 0.0 }
 0x15b   : > { %v1144_v62 = vsel %vm888_vm2, %v685_v46, %v1016_v59  ;;  %vm891_vm3 = vcmp.ge.f32.partialorder %v598_v0, 0.0  ;;  %v1019_v8 = vmul.f32 0.1, %v598_v0 }
 0x15c   : > { %v1145_v1 = vsel %vm889_vm0, %v774_v53, %v1017_v61  ;;  %v1146_v7 = vsel %vm890_vm1, %v509_v54, %v1018_v63  ;;  %v1405_v32 = vadd.f32 %v1404_v21, %v1144_v62  ;;  %v1568_v34 = vmul.f32 %v1144_v62, %v1144_v62 }
 0x15d   : > { %v1227_v2 = vpack.c.bf16 %v1145_v1, %v1144_v62  ;;  %v2646_v15 = vsel %vm891_vm3, %v598_v0, %v1019_v8  ;;  %v1442_v39 = vadd.f32 %v1441_v22, %v1145_v1  ;;  %v1569_v43 = vmul.f32 %v1145_v1, %v1145_v1 }
 0x15e   : > { %v686_v3 = vpop.f32.mrf.mxu2  ;;  %v1228_v18 = vpack.c.bf16 %v2646_v15, %v1146_v7  ;;  %v1570_v45 = vmul.f32 %v1146_v7, %v1146_v7  ;;  %v1571_v51 = vmul.f32 %v2646_v15, %v2646_v15  ;;  %v1701_v55 = vadd.f32 %v2629_v44, %v1568_v34 }
 0x15f   : > { %v775_v4 = vpop.f32.mrf.mxu3  ;;  %v511_v5 = vpop.f32.mrf.mxu0  ;;  %1291 = vst [vmem:[%s2446_s11 + $0x168] sm:$0xff] %v1227_v2  ;;  %v687_v9 = vadd.f32 %v686_v3, %v2441_v49  ;;  %v1738_v59 = vadd.f32 %v2633_v50, %v1569_v43  ;;  %v1332_v61 = vadd.f32 %v1331_v26, %v1146_v7 }
 0x160   : > { %v776_v10 = vadd.f32 %v775_v4, %v2444_v52  ;;  %v600_v11 = vpop.f32.mrf.mxu1  ;;  %v512_v12 = vadd.f32 %v511_v5, %v2427_v40  ;;  %1292 = vst [vmem:[%s2446_s11 + $0x170] sm:$0xff] %v1228_v18  ;;  %v1628_v44 = vadd.f32 %v2637_v60, %v1570_v45 }
 0x161   : > { %v601_v13 = vadd.f32 %v600_v11, %v2429_v41  ;;  %vm892_vm4 = vcmp.ge.f32.partialorder %v687_v9, 0.0  ;;  %v1020_v16 = vmul.f32 0.1, %v687_v9 }
 0x162   : > { %vm893_vm5 = vcmp.ge.f32.partialorder %v776_v10, 0.0  ;;  %v1021_v19 = vmul.f32 0.1, %v776_v10  ;;  %v1022_v25 = vmul.f32 0.1, %v512_v12  ;;  %vm894_vm6 = vcmp.ge.f32.partialorder %v512_v12, 0.0 }
 0x163   : > { %v1148_v20 = vsel %vm892_vm4, %v687_v9, %v1020_v16  ;;  %vm895_vm7 = vcmp.ge.f32.partialorder %v601_v13, 0.0  ;;  %v1023_v35 = vmul.f32 0.1, %v601_v13  ;;  %v1369_v9 = vadd.f32 %v1368_v30, %v2646_v15 }
 0x164   : > { %v1149_v23 = vsel %vm893_vm5, %v776_v10, %v1021_v19  ;;  %v1150_v42 = vsel %vm894_vm6, %v512_v12, %v1022_v25  ;;  %v1572_v56 = vmul.f32 %v1148_v20, %v1148_v20  ;;  %v1665_v10 = vadd.f32 %v1664_v31, %v1571_v51 }
 0x165   : > { %v1229_v28 = vpack.c.bf16 %v1149_v23, %v1148_v20  ;;  %v1151_v27 = vsel %vm895_vm7, %v601_v13, %v1023_v35  ;;  %v1573_v62 = vmul.f32 %v1149_v23, %v1149_v23  ;;  %v1574_v1 = vmul.f32 %v1150_v42, %v1150_v42 }
 0x166   : > { %v689_v29 = vpop.f32.mrf.mxu2  ;;  %v1230_v46 = vpack.c.bf16 %v1151_v27, %v1150_v42  ;;  %v1406_v11 = vadd.f32 %v1405_v32, %v1148_v20  ;;  %v1702_v12 = vadd.f32 %v1701_v55, %v1572_v56  ;;  %v1443_v13 = vadd.f32 %v1442_v39, %v1149_v23 }
 0x167   : > { %v778_v36 = vpop.f32.mrf.mxu3  ;;  %v513_v6 = vpop.f32.mrf.mxu0  ;;  %1293 = vst [vmem:[%s2446_s11 + $0x178] sm:$0xff] %v1229_v28  ;;  %v690_v14 = vadd.f32 %v689_v29, %v2441_v49  ;;  %v1575_v16 = vmul.f32 %v1151_v27, %v1151_v27  ;;  %v1739_v21 = vadd.f32 %v1738_v59, %v1573_v62  ;;  %v1333_v22 = vadd.f32 %v1332_v61, %v1150_v42 }
 0x168   : > { %v779_v37 = vadd.f32 %v778_v36, %v2444_v52  ;;  %v514_v24 = vadd.f32 %v513_v6, %v2427_v40  ;;  %v602_v38 = vpop.f32.mrf.mxu1  ;;  %1294 = vst [vmem:[%s2446_s11 + $0x180] sm:$0xff] %v1230_v46  ;;  %v1629_v60 = vadd.f32 %v1628_v44, %v1574_v1  ;;  %v1370_v25 = vadd.f32 %v1369_v9, %v1151_v27 }
 0x169   : > { %v603_v33 = vadd.f32 %v602_v38, %v2429_v41  ;;  %vm896_vm8 = vcmp.ge.f32.partialorder %v690_v14, 0.0  ;;  %v1024_v47 = vmul.f32 0.1, %v690_v14  ;;  %v1666_v29 = vadd.f32 %v1665_v10, %v1575_v16 }
 0x16a   : > { %vm897_vm9 = vcmp.ge.f32.partialorder %v779_v37, 0.0  ;;  %v1025_v48 = vmul.f32 0.1, %v779_v37  ;;  %vm898_vm10 = vcmp.ge.f32.partialorder %v514_v24, 0.0  ;;  %v1026_v53 = vmul.f32 0.1, %v514_v24 }
 0x16b   : > { %vm899_vm11 = vcmp.ge.f32.partialorder %v603_v33, 0.0  ;;  %v1027_v54 = vmul.f32 0.1, %v603_v33  ;;  %v1152_v57 = vsel %vm896_vm8, %v690_v14, %v1024_v47 }
 0x16c   : > { %v1153_v58 = vsel %vm897_vm9, %v779_v37, %v1025_v48  ;;  %v1154_v2 = vsel %vm898_vm10, %v514_v24, %v1026_v53  ;;  %v1576_v20 = vmul.f32 %v1152_v57, %v1152_v57  ;;  %v1407_v36 = vadd.f32 %v1406_v11, %v1152_v57 }
 0x16d   : > { %v1231_v63 = vpack.c.bf16 %v1153_v58, %v1152_v57  ;;  %v1155_v3 = vsel %vm899_vm11, %v603_v33, %v1027_v54  ;;  %v1577_v30 = vmul.f32 %v1153_v58, %v1153_v58  ;;  %v1578_v6 = vmul.f32 %v1154_v2, %v1154_v2 }
 0x16e   : > { %v691_v0 = vpop.f32.mrf.mxu2  ;;  %v1232_v50 = vpack.c.bf16 %v1155_v3, %v1154_v2  ;;  %v1579_v34 = vmul.f32 %v1155_v3, %v1155_v3  ;;  %v1703_v43 = vadd.f32 %v1702_v12, %v1576_v20  ;;  %v1444_v45 = vadd.f32 %v1443_v13, %v1153_v58 }
 0x16f   : > { %v692_v4 = vadd.f32 %v691_v0, %v2441_v49  ;;  %v780_v5 = vpop.f32.mrf.mxu3  ;;  %v516_v8 = vpop.f32.mrf.mxu0  ;;  %1295 = vst [vmem:[%s2446_s11 + $0x188] sm:$0xff] %v1231_v63  ;;  %v1334_v46 = vadd.f32 %v1333_v22, %v1154_v2  ;;  %v1740_v48 = vadd.f32 %v1739_v21, %v1577_v30  ;;  %v1371_v54 = vadd.f32 %v1370_v25, %v1155_v3 }
 0x170   : > { %v605_v7 = vpop.f32.mrf.mxu1  ;;  %1296 = vst [vmem:[%s2446_s11 + $0x190] sm:$0xff] %v1232_v50  ;;  %v781_v18 = vadd.f32 %v780_v5, %v2444_v52  ;;  %v517_v19 = vadd.f32 %v516_v8, %v2427_v40  ;;  %v1630_v57 = vadd.f32 %v1629_v60, %v1578_v6  ;;  %v1667_v59 = vadd.f32 %v1666_v29, %v1579_v34 }
 0x171   : > { %vm900_vm12 = vcmp.ge.f32.partialorder %v692_v4, 0.0  ;;  %v1028_v17 = vmul.f32 0.1, %v692_v4  ;;  %v606_v15 = vadd.f32 %v605_v7, %v2429_v41 }
 0x172   : > { %vm901_vm13 = vcmp.ge.f32.partialorder %v781_v18, 0.0  ;;  %v1029_v28 = vmul.f32 0.1, %v781_v18  ;;  %vm902_vm14 = vcmp.ge.f32.partialorder %v517_v19, 0.0  ;;  %v1030_v23 = vmul.f32 0.1, %v517_v19 }
 0x173   : > { %v1156_v26 = vsel %vm900_vm12, %v692_v4, %v1028_v17  ;;  %vm903_vm15 = vcmp.ge.f32.partialorder %v606_v15, 0.0  ;;  %v1031_v32 = vmul.f32 0.1, %v606_v15 }
 0x174   : > { %v1157_v31 = vsel %vm901_vm13, %v781_v18, %v1029_v28  ;;  %v1158_v38 = vsel %vm902_vm14, %v517_v19, %v1030_v23  ;;  %v1580_v51 = vmul.f32 %v1156_v26, %v1156_v26  ;;  %v1408_v63 = vadd.f32 %v1407_v36, %v1156_v26 }
 0x175   : > { %v1233_v14 = vpack.c.bf16 %v1157_v31, %v1156_v26  ;;  %v1159_v39 = vsel %vm903_vm15, %v606_v15, %v1031_v32  ;;  %v1581_v58 = vmul.f32 %v1157_v31, %v1157_v31  ;;  %v1445_v2 = vadd.f32 %v1444_v45, %v1157_v31 }
 0x176   : > { %v694_v35 = vpop.f32.mrf.mxu2  ;;  %v1234_v47 = vpack.c.bf16 %v1159_v39, %v1158_v38  ;;  %v1704_v1 = vadd.f32 %v1703_v43, %v1580_v51  ;;  %v1582_v8 = vmul.f32 %v1158_v38, %v1158_v38  ;;  %v1583_v7 = vmul.f32 %v1159_v39, %v1159_v39 }
 0x177   : > { %v783_v37 = vpop.f32.mrf.mxu3  ;;  %v518_v24 = vpop.f32.mrf.mxu0  ;;  %v695_v42 = vadd.f32 %v694_v35, %v2441_v49  ;;  %1297 = vst [vmem:[%s2446_s11 + $0x198] sm:$0xff] %v1233_v14  ;;  %v1741_v17 = vadd.f32 %v1740_v48, %v1581_v58  ;;  %v1335_v18 = vadd.f32 %v1334_v46, %v1158_v38  ;;  %v1372_v26 = vadd.f32 %v1371_v54, %v1159_v39 }
 0x178   : > { %v784_v27 = vadd.f32 %v783_v37, %v2444_v52  ;;  %v607_v33 = vpop.f32.mrf.mxu1  ;;  %1298 = vst [vmem:[%s2446_s11 + $0x1a0] sm:$0xff] %v1234_v47  ;;  %v519_v56 = vadd.f32 %v518_v24, %v2427_v40  ;;  %v1631_v25 = vadd.f32 %v1630_v57, %v1582_v8  ;;  %v1668_v20 = vadd.f32 %v1667_v59, %v1583_v7 }
 0x179   : > { %vm904_vm2 = vcmp.ge.f32.partialorder %v695_v42, 0.0  ;;  %v1032_v53 = vmul.f32 0.1, %v695_v42  ;;  %v608_v62 = vadd.f32 %v607_v33, %v2429_v41 }
 0x17a   : > { %vm905_vm0 = vcmp.ge.f32.partialorder %v784_v27, 0.0  ;;  %v1033_v55 = vmul.f32 0.1, %v784_v27  ;;  %vm906_vm1 = vcmp.ge.f32.partialorder %v519_v56, 0.0  ;;  %v1034_v5 = vmul.f32 0.1, %v519_v56 }
 0x17b   : > { %v1160_v61 = vsel %vm904_vm2, %v695_v42, %v1032_v53  ;;  %vm907_vm3 = vcmp.ge.f32.partialorder %v608_v62, 0.0  ;;  %v1035_v44 = vmul.f32 0.1, %v608_v62 }
 0x17c   : > { %v1161_v0 = vsel %vm905_vm0, %v784_v27, %v1033_v55  ;;  %v1162_v11 = vsel %vm906_vm1, %v519_v56, %v1034_v5  ;;  %v1584_v21 = vmul.f32 %v1160_v61, %v1160_v61  ;;  %v1409_v31 = vadd.f32 %v1408_v63, %v1160_v61 }
 0x17d   : > { %v1235_v4 = vpack.c.bf16 %v1161_v0, %v1160_v61  ;;  %v1163_v19 = vsel %vm907_vm3, %v608_v62, %v1035_v44  ;;  %v1585_v22 = vmul.f32 %v1161_v0, %v1161_v0  ;;  %v1586_v32 = vmul.f32 %v1162_v11, %v1162_v11 }
 0x17e   : > { %v696_v3 = vpop.f32.mrf.mxu2  ;;  %v1236_v60 = vpack.c.bf16 %v1163_v19, %v1162_v11  ;;  %v1705_v36 = vadd.f32 %v1704_v1, %v1584_v21  ;;  %v1446_v6 = vadd.f32 %v1445_v2, %v1161_v0  ;;  %v1336_v24 = vadd.f32 %v1335_v18, %v1162_v11 }
 0x17f   : > { %v697_v9 = vadd.f32 %v696_v3, %v2441_v49  ;;  %v785_v10 = vpop.f32.mrf.mxu3  ;;  %v521_v50 = vpop.f32.mrf.mxu0  ;;  %1299 = vst [vmem:[%s2446_s11 + $0x1a8] sm:$0xff] %v1235_v4  ;;  %v1742_v34 = vadd.f32 %v1741_v17, %v1585_v22  ;;  %v1373_v38 = vadd.f32 %v1372_v26, %v1163_v19  ;;  %v1587_v39 = vmul.f32 %v1163_v19, %v1163_v19 }
 0x180   : > { %v786_v12 = vadd.f32 %v785_v10, %v2444_v52  ;;  %v522_v13 = vadd.f32 %v521_v50, %v2427_v40  ;;  %v610_v16 = vpop.f32.mrf.mxu1  ;;  %1300 = vst [vmem:[%s2446_s11 + $0x1b0] sm:$0xff] %v1236_v60  ;;  %v1632_v48 = vadd.f32 %v1631_v25, %v1586_v32 }
 0x181   : > { %vm908_vm4 = vcmp.ge.f32.partialorder %v697_v9, 0.0  ;;  %v1036_v15 = vmul.f32 0.1, %v697_v9  ;;  %v611_v30 = vadd.f32 %v610_v16, %v2429_v41  ;;  %v1669_v63 = vadd.f32 %v1668_v20, %v1587_v39 }
 0x182   : > { %vm909_vm5 = vcmp.ge.f32.partialorder %v786_v12, 0.0  ;;  %v1037_v28 = vmul.f32 0.1, %v786_v12  ;;  %v1038_v29 = vmul.f32 0.1, %v522_v13  ;;  %vm910_vm6 = vcmp.ge.f32.partialorder %v522_v13, 0.0 }
 0x183   : > { %v1164_v23 = vsel %vm908_vm4, %v697_v9, %v1036_v15  ;;  %vm911_vm7 = vcmp.ge.f32.partialorder %v611_v30, 0.0  ;;  %v1039_v43 = vmul.f32 0.1, %v611_v30 }
 0x184   : > { %v1165_v35 = vsel %vm909_vm5, %v786_v12, %v1037_v28  ;;  %v1166_v33 = vsel %vm910_vm6, %v522_v13, %v1038_v29  ;;  %v1588_v51 = vmul.f32 %v1164_v23, %v1164_v23  ;;  %v1410_v1 = vadd.f32 %v1409_v31, %v1164_v23 }
 0x185   : > { %v1237_v14 = vpack.c.bf16 %v1165_v35, %v1164_v23  ;;  %v1167_v55 = vsel %vm911_vm7, %v611_v30, %v1039_v43  ;;  %v1589_v57 = vmul.f32 %v1165_v35, %v1165_v35  ;;  %v1590_v59 = vmul.f32 %v1166_v33, %v1166_v33 }
 0x186   : > { %v699_v37 = vpop.f32.mrf.mxu2  ;;  %v1238_v61 = vpack.c.bf16 %v1167_v55, %v1166_v33  ;;  %v1447_v2 = vadd.f32 %v1446_v6, %v1165_v35  ;;  %v1591_v4 = vmul.f32 %v1167_v55, %v1167_v55  ;;  %v1706_v3 = vadd.f32 %v1705_v36, %v1588_v51 }
 0x187   : > { %v788_v42 = vpop.f32.mrf.mxu3  ;;  %v523_v27 = vpop.f32.mrf.mxu0  ;;  %1301 = vst [vmem:[%s2446_s11 + $0x1b8] sm:$0xff] %v1237_v14  ;;  %v700_v45 = vadd.f32 %v699_v37, %v2441_v49  ;;  %v1337_v8 = vadd.f32 %v1336_v24, %v1166_v33  ;;  %v1743_v10 = vadd.f32 %v1742_v34, %v1589_v57  ;;  %v1633_v50 = vadd.f32 %v1632_v48, %v1590_v59 }
 0x188   : > { %v789_v46 = vadd.f32 %v788_v42, %v2444_v52  ;;  %v612_v47 = vpop.f32.mrf.mxu1  ;;  %v524_v53 = vadd.f32 %v523_v27, %v2427_v40  ;;  %1302 = vst [vmem:[%s2446_s11 + $0x1c0] sm:$0xff] %v1238_v61  ;;  %v1374_v16 = vadd.f32 %v1373_v38, %v1167_v55  ;;  %v1670_v22 = vadd.f32 %v1669_v63, %v1591_v4 }
 0x189   : > { %v613_v54 = vadd.f32 %v612_v47, %v2429_v41  ;;  %vm912_vm8 = vcmp.ge.f32.partialorder %v700_v45, 0.0  ;;  %v1040_v56 = vmul.f32 0.1, %v700_v45 }
 0x18a   : > { %vm913_vm9 = vcmp.ge.f32.partialorder %v789_v46, 0.0  ;;  %v1041_v62 = vmul.f32 0.1, %v789_v46  ;;  %vm914_vm10 = vcmp.ge.f32.partialorder %v524_v53, 0.0  ;;  %v1042_v0 = vmul.f32 0.1, %v524_v53 }
 0x18b   : > { %v1168_v58 = vsel %vm912_vm8, %v700_v45, %v1040_v56  ;;  %vm915_vm11 = vcmp.ge.f32.partialorder %v613_v54, 0.0  ;;  %v1043_v11 = vmul.f32 0.1, %v613_v54 }
 0x18c   : > { %v1169_v5 = vsel %vm913_vm9, %v789_v46, %v1041_v62  ;;  %v1170_v7 = vsel %vm914_vm10, %v524_v53, %v1042_v0  ;;  %v1411_v60 = vadd.f32 %v1410_v1, %v1168_v58  ;;  %v1592_v26 = vmul.f32 %v1168_v58, %v1168_v58 }
 0x18d   : > { %v1239_v44 = vpack.c.bf16 %v1169_v5, %v1168_v58  ;;  %v1171_v15 = vsel %vm915_vm11, %v613_v54, %v1043_v11  ;;  %v1593_v28 = vmul.f32 %v1169_v5, %v1169_v5  ;;  %v1594_v30 = vmul.f32 %v1170_v7, %v1170_v7 }
 0x18e   : > { %v701_v9 = vpop.f32.mrf.mxu2  ;;  %v1240_v20 = vpack.c.bf16 %v1171_v15, %v1170_v7  ;;  %v1448_v35 = vadd.f32 %v1447_v2, %v1169_v5  ;;  %v1595_v36 = vmul.f32 %v1171_v15, %v1171_v15  ;;  %v1707_v14 = vadd.f32 %v1706_v3, %v1592_v26 }
 0x18f   : > { %v790_v12 = vpop.f32.mrf.mxu3  ;;  %v526_v13 = vpop.f32.mrf.mxu0  ;;  %1303 = vst [vmem:[%s2446_s11 + $0x1c8] sm:$0xff] %v1239_v44  ;;  %v702_v17 = vadd.f32 %v701_v9, %v2441_v49  ;;  %v1744_v37 = vadd.f32 %v1743_v10, %v1593_v28  ;;  %v1338_v24 = vadd.f32 %v1337_v8, %v1170_v7  ;;  %v1634_v47 = vadd.f32 %v1633_v50, %v1594_v30 }
 0x190   : > { %v791_v18 = vadd.f32 %v790_v12, %v2444_v52  ;;  %v527_v19 = vadd.f32 %v526_v13, %v2427_v40  ;;  %v615_v21 = vpop.f32.mrf.mxu1  ;;  %1304 = vst [vmem:[%s2446_s11 + $0x1d0] sm:$0xff] %v1240_v20  ;;  %v1375_v48 = vadd.f32 %v1374_v16, %v1171_v15  ;;  %v1671_v55 = vadd.f32 %v1670_v22, %v1595_v36 }
 0x191   : > { %v616_v25 = vadd.f32 %v615_v21, %v2429_v41  ;;  %vm916_vm12 = vcmp.ge.f32.partialorder %v702_v17, 0.0  ;;  %v1044_v23 = vmul.f32 0.1, %v702_v17 }
 0x192   : > { %vm917_vm13 = vcmp.ge.f32.partialorder %v791_v18, 0.0  ;;  %v1045_v29 = vmul.f32 0.1, %v791_v18  ;;  %vm918_vm14 = vcmp.ge.f32.partialorder %v527_v19, 0.0  ;;  %v1046_v31 = vmul.f32 0.1, %v527_v19 }
 0x193   : > { %vm919_vm15 = vcmp.ge.f32.partialorder %v616_v25, 0.0  ;;  %v1047_v32 = vmul.f32 0.1, %v616_v25  ;;  %v1172_v6 = vsel %vm916_vm12, %v702_v17, %v1044_v23 }
 0x194   : > { %v1173_v34 = vsel %vm917_vm13, %v791_v18, %v1045_v29  ;;  %v1596_v42 = vmul.f32 %v1172_v6, %v1172_v6  ;;  %v1174_v27 = vsel %vm918_vm14, %v527_v19, %v1046_v31  ;;  %v1412_v56 = vadd.f32 %v1411_v60, %v1172_v6 }
 0x195   : > { %v1241_v38 = vpack.c.bf16 %v1173_v34, %v1172_v6  ;;  %v1175_v33 = vsel %vm919_vm15, %v616_v25, %v1047_v32  ;;  %v1597_v51 = vmul.f32 %v1173_v34, %v1173_v34  ;;  %v1449_v57 = vadd.f32 %v1448_v35, %v1173_v34 }
 0x196   : > { %v704_v39 = vpop.f32.mrf.mxu2  ;;  %v1242_v53 = vpack.c.bf16 %v1175_v33, %v1174_v27  ;;  %v1598_v59 = vmul.f32 %v1174_v27, %v1174_v27  ;;  %v1708_v58 = vadd.f32 %v1707_v14, %v1596_v42  ;;  %v1339_v0 = vadd.f32 %v1338_v24, %v1174_v27 }
 0x197   : > { %v705_v43 = vadd.f32 %v704_v39, %v2441_v49  ;;  %v793_v45 = vpop.f32.mrf.mxu3  ;;  %v528_v46 = vpop.f32.mrf.mxu0  ;;  %1305 = vst [vmem:[%s2446_s11 + $0x1d8] sm:$0xff] %v1241_v38  ;;  %v1599_v1 = vmul.f32 %v1175_v33, %v1175_v33  ;;  %v1745_v4 = vadd.f32 %v1744_v37, %v1597_v51  ;;  %v1376_v10 = vadd.f32 %v1375_v48, %v1175_v33 }
 0x198   : > { %v617_v54 = vpop.f32.mrf.mxu1  ;;  %1306 = vst [vmem:[%s2446_s11 + $0x1e0] sm:$0xff] %v1242_v53  ;;  %v794_v62 = vadd.f32 %v793_v45, %v2444_v52  ;;  %v529_v63 = vadd.f32 %v528_v46, %v2427_v40  ;;  %v1635_v9 = vadd.f32 %v1634_v47, %v1598_v59 }
 0x199   : > { %vm920_vm2 = vcmp.ge.f32.partialorder %v705_v43, 0.0  ;;  %v1048_v61 = vmul.f32 0.1, %v705_v43  ;;  %v618_v2 = vadd.f32 %v617_v54, %v2429_v41  ;;  %v1672_v11 = vadd.f32 %v1671_v55, %v1599_v1 }
 0x19a   : > { %vm921_vm0 = vcmp.ge.f32.partialorder %v794_v62, 0.0  ;;  %v1049_v3 = vmul.f32 0.1, %v794_v62  ;;  %vm922_vm1 = vcmp.ge.f32.partialorder %v529_v63, 0.0  ;;  %v1050_v44 = vmul.f32 0.1, %v529_v63 }
 0x19b   : > { %v1176_v5 = vsel %vm920_vm2, %v705_v43, %v1048_v61  ;;  %vm923_vm3 = vcmp.ge.f32.partialorder %v618_v2, 0.0  ;;  %v1051_v7 = vmul.f32 0.1, %v618_v2 }
 0x19c   : > { %v1600_v8 = vmul.f32 %v1176_v5, %v1176_v5  ;;  %v1177_v50 = vsel %vm921_vm0, %v794_v62, %v1049_v3  ;;  %v1413_v12 = vadd.f32 %v1412_v56, %v1176_v5  ;;  %v1178_v17 = vsel %vm922_vm1, %v529_v63, %v1050_v44 }
 0x19d   : > { %v1243_v16 = vpack.c.bf16 %v1177_v50, %v1176_v5  ;;  %v1179_v18 = vsel %vm923_vm3, %v618_v2, %v1051_v7  ;;  %v1601_v22 = vmul.f32 %v1177_v50, %v1177_v50  ;;  %v1340_v60 = vadd.f32 %v1339_v0, %v1178_v17 }
 0x19e   : > { %v706_v40 = vpop.f32.mrf.mxu2  ;;  %v1709_v13 = vadd.f32 %v1708_v58, %v1600_v8  ;;  %v1602_v15 = vmul.f32 %v1178_v17, %v1178_v17  ;;  %v1244_v25 = vpack.c.bf16 %v1179_v18, %v1178_v17  ;;  %v1377_v26 = vadd.f32 %v1376_v10, %v1179_v18 }
 0x19f   : > { %v795_v41 = vpop.f32.mrf.mxu3  ;;  %v707_v19 = vadd.f32 %v706_v40, %v2441_v49  ;;  %1307 = vst [vmem:[%s2446_s11 + $0x1e8] sm:$0xff] %v1243_v16  ;;  %v1603_v28 = vmul.f32 %v1179_v18, %v1179_v18  ;;  %v1341_v23 = vrot.slane %v1340_v60, 4  ;;  %v1450_v29 = vadd.f32 %v1449_v57, %v1177_v50 }
 0x1a0   : > { %v796_v21 = vadd.f32 %v795_v41, %v2444_v52  ;;  %v1636_v49 = vadd.f32 %v1635_v9, %v1602_v15  ;;  %1308 = vst [vmem:[%s2446_s11 + $0x1f0] sm:$0xff] %v1244_v25  ;;  %v1378_v30 = vrot.slane %v1377_v26, 4  ;;  %v1746_v14 = vadd.f32 %v1745_v4, %v1601_v22 }
 0x1a1   : > { %vm924_vm4 = vcmp.ge.f32.partialorder %v707_v19, 0.0  ;;  %v1052_v20 = vmul.f32 0.1, %v707_v19  ;;  %v1673_v31 = vadd.f32 %v1672_v11, %v1603_v28  ;;  %v1342_v35 = vadd.f32 %v1341_v23, %v1340_v60 }
 0x1a2   : > { %vm925_vm5 = vcmp.ge.f32.partialorder %v796_v21, 0.0  ;;  %v1053_v52 = vmul.f32 0.1, %v796_v21  ;;  %v1637_v36 = vrot.slane %v1636_v49, 4  ;;  %v1379_v37 = vadd.f32 %v1378_v30, %v1377_v26 }
 0x1a3   : > { %v1180_v32 = vsel %vm924_vm4, %v707_v19, %v1052_v20  ;;  %v1674_v24 = vrot.slane %v1673_v31, 4  ;;  %v1343_v39 = vrot.slane %v1342_v35, 2 }
 0x1a4   : > { %v1414_v6 = vadd.f32 %v1413_v12, %v1180_v32  ;;  %v1604_v34 = vmul.f32 %v1180_v32, %v1180_v32  ;;  %v1181_v38 = vsel %vm925_vm5, %v796_v21, %v1053_v52  ;;  %v1638_v42 = vadd.f32 %v1637_v36, %v1636_v49 }
 0x1a5   : > { %v1380_v43 = vrot.slane %v1379_v37, 2  ;;  %v1675_v45 = vadd.f32 %v1674_v24, %v1673_v31  ;;  %v1245_v46 = vpack.c.bf16 %v1181_v38, %v1180_v32  ;;  %v1451_v47 = vadd.f32 %v1450_v29, %v1181_v38 }
 0x1a6   : > { %v1415_v27 = vrot.slane %v1414_v6, 4  ;;  %v1710_v33 = vadd.f32 %v1709_v13, %v1604_v34  ;;  %v1344_v48 = vadd.f32 %v1343_v39, %v1342_v35  ;;  %v1639_v51 = vrot.slane %v1638_v42, 2 }
 0x1a7   : > { %v1381_v55 = vadd.f32 %v1380_v43, %v1379_v37  ;;  %v1676_v56 = vrot.slane %v1675_v45, 2  ;;  %1309 = vst [vmem:[%s2446_s11 + $0x1f8] sm:$0xff] %v1245_v46  ;;  %v1452_v57 = vrot.slane %v1451_v47, 4  ;;  %v1605_v59 = vmul.f32 %v1181_v38, %v1181_v38 }
 0x1a8   : > { %v1416_v53 = vadd.f32 %v1415_v27, %v1414_v6  ;;  %v1711_v54 = vrot.slane %v1710_v33, 4  ;;  %v1345_v61 = vrot.slane %v1344_v48, 1  ;;  %v1640_v62 = vadd.f32 %v1639_v51, %v1638_v42 }
 0x1aa   : > { %v1417_v63 = vrot.slane %v1416_v53, 2  ;;  %v1712_v58 = vadd.f32 %v1711_v54, %v1710_v33 }
 0x1ab   : > { %2179 = shalt.err (!%p2176_p3)
}
 0x1ac   : > { %s2249_s10 = smov 256   ;;  %s2250_s11 = smov 16   ;;  %v1382_v0 = vrot.slane %v1381_v55, 1  ;;  %v1677_v1 = vadd.f32 %v1676_v56, %v1675_v45  ;;  %v1453_v2 = vadd.f32 %v1452_v57, %v1451_v47  ;;  %v1747_v4 = vadd.f32 %v1746_v14, %v1605_v59 }
 0x1ad   : > { %2105 = dma.vmem_to_hbm [thread:$0]  (%p2314_p5), %s2720_s20, 8192, %s2722_s22, %s1769_s23, %s2249_s10, %s2249_s10, %s2250_s11   ;;  %v1641_v5 = vrot.slane %v1640_v62, 1  ;;  %v1418_v3 = vadd.f32 %v1417_v63, %v1416_v53  ;;  %v1713_v8 = vrot.slane %v1712_v58, 2  ;;  %v1346_v7 = vadd.f32 %v1345_v61, %v1344_v48 }
 0x1ae   : > { %v1383_v44 = vadd.f32 %v1382_v0, %v1381_v55  ;;  %v1678_v9 = vrot.slane %v1677_v1, 1  ;;  %v1454_v10 = vrot.slane %v1453_v2, 2  ;;  %v1748_v50 = vrot.slane %v1747_v4, 4  ;;  %s1905_s12 = sshll.u32 %s2432_s8, 5  ;;  %s1803_s14 = scalar_lea.hbm %s2778_s4, %s2337_s9 }
 0x1af   : > { %v1419_v40 = vrot.slane %v1418_v3, 1  ;;  %v1714_v11 = vadd.f32 %v1713_v8, %v1712_v58  ;;  %vm1465_vm6 = vcmask 1040384   ;;  %v1642_v19 = vadd.f32 %v1641_v5, %v1640_v62  ;;  %s202_s20 = scalar_lea.vmem [#allocation4], %s1905_s12  ;;  %s1807_s23 = sshll.u32 %s1803_s14, 4  ;;  %s1808_s23 = int_to_ptr.hbm [resolvable:$true] %s1807_s23 }
 0x1b0   : > { %v1462_v12 = vrot.slane %v1383_v44, 7  ;;  %v1455_v13 = vadd.f32 %v1454_v10, %v1453_v2  ;;  %v1749_v16 = vadd.f32 %v1748_v50, %v1747_v4  ;;  %v1679_v41 = vadd.f32 %v1678_v9, %v1677_v1  ;;  %s1805_s22 = sshll.u32 %s202_s20, 4  ;;  %s1774_s27 = scalar_lea.sflag [#allocation5], %s2432_s8  ;;  %s1806_s22 = int_to_ptr.vmem [resolvable:$true] %s1805_s22 }
 0x1b1   : > { %v1420_v17 = vadd.f32 %v1419_v40, %v1418_v3  ;;  %v1715_v18 = vrot.slane %v1714_v11, 1  ;;  %v1472_v26 = vlaneseq  ;;  %vm1467_vm7 = vcmask 1042434   ;;  %s2194_s28 = sshra.s32 %s1808_s23, 4  ;;  %s2200_s5 = scalar_lea.hbm %s2778_s4, 64  ;;  %s2195_s28 = int_to_ptr.hbm [resolvable:$true] %s2194_s28 }
 0x1b2   : > { %v1456_v21 = vrot.slane %v1455_v13, 1  ;;  %v1750_v22 = vrot.slane %v1749_v16, 2  ;;  %v1466_v60 = vsel %vm1465_vm6, %v1346_v7, %v1462_v12  ;;  %v1758_v15 = vrot.slane %v1679_v41, 7  ;;  %s2196_s9 = scalar_lea.hbm %s2195_s28, 32  ;;  %p2201_p9 = scmp.lt.s32.totalorder %s2195_s28, %s2778_s4 }
 0x1b3   : > { %v1463_v25 = vrot.slane %v1420_v17, 6  ;;  %v1716_v23 = vadd.f32 %v1715_v18, %v1714_v11  ;;  %vm1469_vm8 = vcmask 1041408   ;;  %vm1474_vm9 = vcmp.lt.s32.totalorder %v1472_v26, 512  ;;  %p2197_p4 = scmp.ne.s32.totalorder %s2195_s28, %s2196_s9  ;;  %p2202_p10 = scmp.lt.s32.totalorder %s2200_s5, %s2196_s9 }
 0x1b4   : > { %v1457_v28 = vadd.f32 %v1456_v21, %v1455_v13  ;;  %v1751_v20 = vadd.f32 %v1750_v22, %v1749_v16  ;;  %v1761_v49 = vsel %vm1465_vm6, %v1642_v19, %v1758_v15 }
 0x1b5   : > { %v1759_v32 = vrot.slane %v1716_v23, 6  ;;  %p2198_p7 = pnand %p2197_p4, %p2314_p5  ;;  %p2203_p11 = por %p2202_p10, %p2201_p9 }
 0x1b6   : > { %v1464_v52 = vrot.slane %v1457_v28, 5  ;;  %v1752_v29 = vrot.slane %v1751_v20, 1 }
 0x1b7   : > { %p2199_p8 = pneg %p2198_p7 }
 0x1b8   : > { %v1468_v30 = vsel %vm1467_vm7, %v1463_v25, %v1464_v52  ;;  %v1753_v31 = vadd.f32 %v1752_v29, %v1751_v20 }
 0x1b9   : > { %v1470_v35 = vsel %vm1469_vm8, %v1466_v60, %v1468_v30  ;;  %p2204_p12 = pnand %p2203_p11, %p2199_p8 }
 0x1ba   : > { %1476 = vst.msk [vmem:[%s202_s20] ss:$8 sm:$0xf] %vm1474_vm9, %v1470_v35  ;;  %v1760_v36 = vrot.slane %v1753_v31, 5 }
 0x1bc   : > { %v1762_v6 = vsel %vm1467_vm7, %v1759_v32, %v1760_v36 }
 0x1bd   : > { %v1763_v34 = vsel %vm1469_vm8, %v1761_v49, %v1762_v6 }
 0x1be   : > { %2068 = vst.msk [vmem:[%s202_s20 + $0x1] ss:$8 sm:$0xf] %vm1474_vm9, %v1763_v34 }
 0x1bf   : > { %2207 = shalt.err (!%p2204_p12)
}
 0x1c0   : > { %2106 = dma.vmem_to_hbm [thread:$0]  (%p2314_p5), %s1806_s22, 512, %s1808_s23, %s1774_s27  }
 0x1c1 PF: > { %p2116_p13 = scmp.ge.s32.totalorder %s2246_s18, 2  ;;  %s1819_s8 = sand.u32 1, %s2234_s15  }
 0x1c2   : > { %s1820_s10 = scalar_lea.sflag [#allocation3], %s1819_s8 }
 0x1c3   : > { %p2110_p0 = pnand %p2116_p13, %p2318_p6 }
 0x1c5   : > { %p2111_p1 = pneg %p2110_p0 }
 0x1c7   : > { %2225 = dma.done.wait (%p2111_p1), %s1820_s10, 8192  }
 0x1c8   : > { %2227 = vsyncadd (%p2111_p1), %s1820_s10, 4294959104  ;;  %s1830_s11 = scalar_lea.sflag [#allocation5], %s1819_s8 }
 0x1c9   : > { %2229 = dma.done.wait (%p2111_p1), %s1830_s11, 512  }
 0x1ca   : > { %2231 = vsyncadd (%p2111_p1), %s1830_s11, 4294966784  ;;  %p18_p5 = scmp.ge.s32.totalorder %s2301_s21, 4   ;;  %s2781_s15 = smov %s2238_s16 }
 0x1cb   : > { %s2782_s16 = smov %s2242_s17  ;;  %s2783_s17 = smov %s2312_s24 }
 0x1cc   : > { %s2784_s18 = smov %s2301_s21  ;;  %20 = sbr.rel (!%p18_p5) target bundleno = 5 (0x5), region = 85 }
 0x1d1   :  { %1836 = vsyncpa [#allocation3], 1 }
 0x1d2   :  { %1838 = vsyncpa [#allocation3 + $0x1], 1 }
 0x1d3   :  { %1839 = vsyncpa [#allocation5], 1 }
 0x1d4   :  { %1841 = vsyncpa [#allocation5 + $0x1], 1 }

</bundles_post_ra>
